<compile_context>
chip_gen: v5e
topology: v5e:2x2
jax: 0.10.0
libtpu: 0.0.40
codegen_flags: <defaults>
</compile_context>

<pallas_src>
import functools

import jax
import jax.numpy as jnp
from jax.experimental import pallas as pl
from jax.experimental.pallas import tpu as pltpu


def _mlp_dropout_kernel(x_ref, w1_ref, b1_ref, w2_ref, b2_ref, mask_ref,
                        out_ref, *, n_samples: int, n_actions: int):
    S = n_samples
    A = n_actions
    tb = x_ref.shape[0]

    # ---- Layer 1 (computed once per batch tile, NOT per duplicated sample).
    x = x_ref[...]                                               # (tb, D) f32
    h0 = jnp.dot(x, w1_ref[...], preferred_element_type=jnp.float32) + b1_ref[...]
    h0 = jnp.maximum(h0, 0.0)                                    # (tb, H)

    # Hoist weight/bias loads out of the sample loop.
    w2 = w2_ref[...]                                             # (H, 2A)
    b2 = b2_ref[...]                                             # (1, 2A)

    # ---- Per-sample dropout + fused layer-2 head, accumulated over samples.
    sum_m = jnp.zeros((tb, A), jnp.float32)
    sum_v = jnp.zeros((tb, A), jnp.float32)
    om_samples = []
    for s in range(S):                                           # static unroll
        h = h0 * mask_ref[s]                                     # (tb, H) dropout
        o = jnp.dot(h, w2, preferred_element_type=jnp.float32) + b2   # (tb, 2A)
        om = o[:, :A]                                            # mean logits
        ov = o[:, A:]                                            # var logits
        # Numerically stable softplus(x) = max(x,0) + log(1 + exp(-|x|)).
        sp = jnp.maximum(ov, 0.0) + jnp.log(1.0 + jnp.exp(-jnp.abs(ov))) + 1e-10
        sum_m = sum_m + om
        sum_v = sum_v + sp
        om_samples.append(om)

    inv_s = jnp.float32(1.0 / S)
    mean = sum_m * inv_s                                         # E_s[mean logits]
    var = sum_v * inv_s                                          # E_s[softplus(var logits)]

    # Centered unbiased variance over samples (torch.var default, ddof=1).
    sq = jnp.zeros((tb, A), jnp.float32)
    for om in om_samples:
        d = om - mean
        sq = sq + d * d
    evar = sq * jnp.float32(1.0 / (S - 1))

    # ---- Single lane-dense output slab: [mean | var | evar].
    out_ref[:, 0:A] = mean
    out_ref[:, A:2 * A] = var
    out_ref[:, 2 * A:3 * A] = evar


def mlp_dropout_forward(x, params, *, n_samples: int, p_drop: float, seed: int = 0):
    """Aggregate=True forward pass of MLPDropOut."""
    # TODO(synk): only the default aggregate=True branch is implemented here.
    w1, b1, w2, b2 = params
    x = x.astype(jnp.float32)
    B, D = x.shape
    H = w1.shape[1]
    A = w2.shape[1] // 2
    S = n_samples
    assert S > 1, "n_samples must be > 1 for the unbiased epistemic variance"

    # Split the interleaved output head (even cols -> mean logits, odd -> var
    # logits) and fuse it back into ONE (H, 2A) matmul operand.
    w2cat = jnp.concatenate([w2[:, 0::2], w2[:, 1::2]], axis=1).astype(jnp.float32)
    b2cat = jnp.concatenate([b2[0::2], b2[1::2]]).astype(jnp.float32)

    # Pre-scaled dropout keep mask, one independent mask per (sample, row).
    key = jax.random.PRNGKey(seed)
    keep = jax.random.bernoulli(key, p=1.0 - p_drop, shape=(S, B, H))
    mask = keep.astype(jnp.float32) * (1.0 / (1.0 - p_drop))     # (S, B, H)

    # Batch tiling: small batches run as a single block; large batches are
    # tiled so the (S, tb, H) mask block stays well inside scoped VMEM and the
    # grid can be sharded across TensorCores (v7x).
    block_b = B if B <= 256 else 256
    grid = (pl.cdiv(B, block_b),)

    kernel = functools.partial(_mlp_dropout_kernel, n_samples=S, n_actions=A)

    out = pl.pallas_call(
        kernel,
        grid=grid,
        in_specs=[
            pl.BlockSpec((block_b, D), lambda i: (i, 0)),        # x
            pl.BlockSpec((D, H), lambda i: (0, 0)),              # w1
            pl.BlockSpec((1, H), lambda i: (0, 0)),              # b1
            pl.BlockSpec((H, 2 * A), lambda i: (0, 0)),          # w2 (fused head)
            pl.BlockSpec((1, 2 * A), lambda i: (0, 0)),          # b2 (fused head)
            pl.BlockSpec((S, block_b, H), lambda i: (0, i, 0)),  # dropout mask
        ],
        out_specs=pl.BlockSpec((block_b, 3 * A), lambda i: (i, 0)),
        out_shape=jax.ShapeDtypeStruct((B, 3 * A), jnp.float32),
        compiler_params=pltpu.CompilerParams(
            dimension_semantics=("parallel",)),
    )(
        x,
        w1.astype(jnp.float32),
        b1.reshape(1, H).astype(jnp.float32),
        w2cat,
        b2cat.reshape(1, 2 * A),
        mask,
    )

    approx_mean = out[:, 0:A]
    approx_var = out[:, A:2 * A]
    approx_epistemic_var = out[:, 2 * A:3 * A]
    return approx_mean, approx_var, approx_epistemic_var


def init_params(key, obs_size: int, hidden: int, n_actions: int):
    """Deterministic init mimicking torch.nn.Linear (uniform +/- 1/sqrt(fan_in))."""
    k1, k2, k3, k4 = jax.random.split(key, 4)
    lim1 = 1.0 / jnp.sqrt(obs_size)
    lim2 = 1.0 / jnp.sqrt(hidden)
    w1 = jax.random.uniform(k1, (obs_size, hidden), jnp.float32, -lim1, lim1)
    b1 = jax.random.uniform(k2, (hidden,), jnp.float32, -lim1, lim1)
    w2 = jax.random.uniform(k3, (hidden, 2 * n_actions), jnp.float32, -lim2, lim2)
    b2 = jax.random.uniform(k4, (2 * n_actions,), jnp.float32, -lim2, lim2)
    return (w1, b1, w2, b2)


if __name__ == "__main__":
    # Shapes consistent with the module: obs_size=16, n_actions=4,
    # hidden_dims=[128] (module default), n_samples=20, p_drop=0.25, batch=2.
    OBS, ACT, HID = 16, 4, 128
    N_SAMPLES, P_DROP = 20, 0.25
    B = 2

    key = jax.random.PRNGKey(0)
    kx, kp = jax.random.split(key)
    x = jax.random.normal(kx, (B, OBS), dtype=jnp.float32)
    params = init_params(kp, OBS, HID, ACT)

    approx_mean, approx_var, approx_epistemic_var = jax.block_until_ready(
        mlp_dropout_forward(x, params, n_samples=N_SAMPLES, p_drop=P_DROP, seed=0)
    )

    # Basic sanity: correct shapes, finite values, non-negative variances.
    assert approx_mean.shape == (B, ACT)
    assert approx_var.shape == (B, ACT)
    assert approx_epistemic_var.shape == (B, ACT)
    assert bool(jnp.all(jnp.isfinite(approx_mean)))
    assert bool(jnp.all(approx_var > 0.0))
    assert bool(jnp.all(approx_epistemic_var >= 0.0))

    print("KERNEL_OK")
</pallas_src>

<mosaic_0001>
module attributes {stable_mosaic.version = 11 : i64} {
  func.func @_mlp_dropout_kernel(%arg0: i32, %arg1: memref<2x16xf32, #tpu.memory_space<vmem>>, %arg2: memref<16x128xf32, #tpu.memory_space<vmem>>, %arg3: memref<1x128xf32, #tpu.memory_space<vmem>>, %arg4: memref<128x8xf32, #tpu.memory_space<vmem>>, %arg5: memref<1x8xf32, #tpu.memory_space<vmem>>, %arg6: memref<20x2x128xf32, #tpu.memory_space<vmem>>, %arg7: memref<2x12xf32, #tpu.memory_space<vmem>>) attributes {dimension_semantics = [#tpu.dimension_semantics<parallel>], iteration_bounds = array<i64: 1>, scalar_prefetch = 0 : i64, scratch_operands = 0 : i64, tpu.core_type = #tpu.core_type<tc>, window_params = [{transform_indices = @transform_0, window_bounds = array<i64: 2, 16>}, {pipeline_mode = #tpu.pipeline_mode<synchronous>, transform_indices = @transform_1, window_bounds = array<i64: 16, 128>}, {pipeline_mode = #tpu.pipeline_mode<synchronous>, transform_indices = @transform_2, window_bounds = array<i64: 1, 128>}, {pipeline_mode = #tpu.pipeline_mode<synchronous>, transform_indices = @transform_3, window_bounds = array<i64: 128, 8>}, {pipeline_mode = #tpu.pipeline_mode<synchronous>, transform_indices = @transform_4, window_bounds = array<i64: 1, 8>}, {transform_indices = @transform_5, window_bounds = array<i64: 20, 2, 128>}, {transform_indices = @transform_6, window_bounds = array<i64: 2, 12>}]} {
    %c0 = arith.constant 0 : index
    %c0_0 = arith.constant 0 : index
    %0 = vector.load %arg1[%c0, %c0_0] : memref<2x16xf32, #tpu.memory_space<vmem>>, vector<2x16xf32>
    %c0_1 = arith.constant 0 : index
    %c0_2 = arith.constant 0 : index
    %1 = vector.load %arg2[%c0_1, %c0_2] : memref<16x128xf32, #tpu.memory_space<vmem>>, vector<16x128xf32>
    %cst = arith.constant dense<0.000000e+00> : vector<2x128xf32>
    %2 = tpu.matmul %0, %1, %cst {dimension_numbers = #tpu.dot_dimension_numbers<[1], [0], [0], [1], [0, 0, 1, 1], [], []>} : vector<2x16xf32>, vector<16x128xf32>, vector<2x128xf32> -> vector<2x128xf32>
    %c0_3 = arith.constant 0 : index
    %c0_4 = arith.constant 0 : index
    %3 = vector.load %arg3[%c0_3, %c0_4] : memref<1x128xf32, #tpu.memory_space<vmem>>, vector<1x128xf32>
    %4 = vector.broadcast %3 : vector<1x128xf32> to vector<2x128xf32>
    %5 = arith.addf %2, %4 : vector<2x128xf32>
    %cst_5 = arith.constant 0.000000e+00 : f32
    %6 = vector.broadcast %cst_5 : f32 to vector<2x128xf32>
    %7 = arith.maximumf %5, %6 : vector<2x128xf32>
    %c0_6 = arith.constant 0 : index
    %c0_7 = arith.constant 0 : index
    %8 = vector.load %arg4[%c0_6, %c0_7] : memref<128x8xf32, #tpu.memory_space<vmem>>, vector<128x8xf32>
    %c0_8 = arith.constant 0 : index
    %c0_9 = arith.constant 0 : index
    %9 = vector.load %arg5[%c0_8, %c0_9] : memref<1x8xf32, #tpu.memory_space<vmem>>, vector<1x8xf32>
    %cst_10 = arith.constant 0.000000e+00 : f32
    %10 = vector.broadcast %cst_10 : f32 to vector<2x4xf32>
    %cst_11 = arith.constant 0.000000e+00 : f32
    %11 = vector.broadcast %cst_11 : f32 to vector<2x4xf32>
    %c0_12 = arith.constant 0 : index
    %c0_13 = arith.constant 0 : index
    %c0_14 = arith.constant 0 : index
    %12 = vector.load %arg6[%c0_12, %c0_13, %c0_14] : memref<20x2x128xf32, #tpu.memory_space<vmem>>, vector<1x2x128xf32>
    %13 = vector.shape_cast %12 : vector<1x2x128xf32> to vector<2x128xf32>
    %14 = arith.mulf %7, %13 : vector<2x128xf32>
    %cst_15 = arith.constant dense<0.000000e+00> : vector<2x8xf32>
    %15 = tpu.matmul %14, %8, %cst_15 {dimension_numbers = #tpu.dot_dimension_numbers<[1], [0], [0], [1], [0, 0, 1, 1], [], []>} : vector<2x128xf32>, vector<128x8xf32>, vector<2x8xf32> -> vector<2x8xf32>
    %16 = vector.broadcast %9 : vector<1x8xf32> to vector<2x8xf32>
    %17 = arith.addf %15, %16 : vector<2x8xf32>
    %18 = vector.extract_strided_slice %17 {offsets = [0, 0], sizes = [2, 4], strides = [1, 1]} : vector<2x8xf32> to vector<2x4xf32>
    %19 = vector.extract_strided_slice %17 {offsets = [0, 4], sizes = [2, 4], strides = [1, 1]} : vector<2x8xf32> to vector<2x4xf32>
    %cst_16 = arith.constant 0.000000e+00 : f32
    %20 = vector.broadcast %cst_16 : f32 to vector<2x4xf32>
    %21 = arith.maximumf %19, %20 : vector<2x4xf32>
    %22 = math.absf %19 : vector<2x4xf32>
    %cst_17 = arith.constant 0.000000e+00 : f32
    %23 = vector.broadcast %cst_17 : f32 to vector<2x4xf32>
    %24 = arith.subf %23, %22 : vector<2x4xf32>
    %25 = math.exp %24 : vector<2x4xf32>
    %cst_18 = arith.constant 1.000000e+00 : f32
    %26 = vector.broadcast %cst_18 : f32 to vector<2x4xf32>
    %27 = arith.addf %26, %25 : vector<2x4xf32>
    %28 = math.log %27 : vector<2x4xf32>
    %29 = arith.addf %21, %28 : vector<2x4xf32>
    %cst_19 = arith.constant 1.000000e-10 : f32
    %30 = vector.broadcast %cst_19 : f32 to vector<2x4xf32>
    %31 = arith.addf %29, %30 : vector<2x4xf32>
    %32 = arith.addf %10, %18 : vector<2x4xf32>
    %33 = arith.addf %11, %31 : vector<2x4xf32>
    %c1 = arith.constant 1 : index
    %c0_20 = arith.constant 0 : index
    %c0_21 = arith.constant 0 : index
    %34 = vector.load %arg6[%c1, %c0_20, %c0_21] : memref<20x2x128xf32, #tpu.memory_space<vmem>>, vector<1x2x128xf32>
    %35 = vector.shape_cast %34 : vector<1x2x128xf32> to vector<2x128xf32>
    %36 = arith.mulf %7, %35 : vector<2x128xf32>
    %cst_22 = arith.constant dense<0.000000e+00> : vector<2x8xf32>
    %37 = tpu.matmul %36, %8, %cst_22 {dimension_numbers = #tpu.dot_dimension_numbers<[1], [0], [0], [1], [0, 0, 1, 1], [], []>} : vector<2x128xf32>, vector<128x8xf32>, vector<2x8xf32> -> vector<2x8xf32>
    %38 = vector.broadcast %9 : vector<1x8xf32> to vector<2x8xf32>
    %39 = arith.addf %37, %38 : vector<2x8xf32>
    %40 = vector.extract_strided_slice %39 {offsets = [0, 0], sizes = [2, 4], strides = [1, 1]} : vector<2x8xf32> to vector<2x4xf32>
    %41 = vector.extract_strided_slice %39 {offsets = [0, 4], sizes = [2, 4], strides = [1, 1]} : vector<2x8xf32> to vector<2x4xf32>
    %cst_23 = arith.constant 0.000000e+00 : f32
    %42 = vector.broadcast %cst_23 : f32 to vector<2x4xf32>
    %43 = arith.maximumf %41, %42 : vector<2x4xf32>
    %44 = math.absf %41 : vector<2x4xf32>
    %cst_24 = arith.constant 0.000000e+00 : f32
    %45 = vector.broadcast %cst_24 : f32 to vector<2x4xf32>
    %46 = arith.subf %45, %44 : vector<2x4xf32>
    %47 = math.exp %46 : vector<2x4xf32>
    %cst_25 = arith.constant 1.000000e+00 : f32
    %48 = vector.broadcast %cst_25 : f32 to vector<2x4xf32>
    %49 = arith.addf %48, %47 : vector<2x4xf32>
    %50 = math.log %49 : vector<2x4xf32>
    %51 = arith.addf %43, %50 : vector<2x4xf32>
    %cst_26 = arith.constant 1.000000e-10 : f32
    %52 = vector.broadcast %cst_26 : f32 to vector<2x4xf32>
    %53 = arith.addf %51, %52 : vector<2x4xf32>
    %54 = arith.addf %32, %40 : vector<2x4xf32>
    %55 = arith.addf %33, %53 : vector<2x4xf32>
    %c2 = arith.constant 2 : index
    %c0_27 = arith.constant 0 : index
    %c0_28 = arith.constant 0 : index
    %56 = vector.load %arg6[%c2, %c0_27, %c0_28] : memref<20x2x128xf32, #tpu.memory_space<vmem>>, vector<1x2x128xf32>
    %57 = vector.shape_cast %56 : vector<1x2x128xf32> to vector<2x128xf32>
    %58 = arith.mulf %7, %57 : vector<2x128xf32>
    %cst_29 = arith.constant dense<0.000000e+00> : vector<2x8xf32>
    %59 = tpu.matmul %58, %8, %cst_29 {dimension_numbers = #tpu.dot_dimension_numbers<[1], [0], [0], [1], [0, 0, 1, 1], [], []>} : vector<2x128xf32>, vector<128x8xf32>, vector<2x8xf32> -> vector<2x8xf32>
    %60 = vector.broadcast %9 : vector<1x8xf32> to vector<2x8xf32>
    %61 = arith.addf %59, %60 : vector<2x8xf32>
    %62 = vector.extract_strided_slice %61 {offsets = [0, 0], sizes = [2, 4], strides = [1, 1]} : vector<2x8xf32> to vector<2x4xf32>
    %63 = vector.extract_strided_slice %61 {offsets = [0, 4], sizes = [2, 4], strides = [1, 1]} : vector<2x8xf32> to vector<2x4xf32>
    %cst_30 = arith.constant 0.000000e+00 : f32
    %64 = vector.broadcast %cst_30 : f32 to vector<2x4xf32>
    %65 = arith.maximumf %63, %64 : vector<2x4xf32>
    %66 = math.absf %63 : vector<2x4xf32>
    %cst_31 = arith.constant 0.000000e+00 : f32
    %67 = vector.broadcast %cst_31 : f32 to vector<2x4xf32>
    %68 = arith.subf %67, %66 : vector<2x4xf32>
    %69 = math.exp %68 : vector<2x4xf32>
    %cst_32 = arith.constant 1.000000e+00 : f32
    %70 = vector.broadcast %cst_32 : f32 to vector<2x4xf32>
    %71 = arith.addf %70, %69 : vector<2x4xf32>
    %72 = math.log %71 : vector<2x4xf32>
    %73 = arith.addf %65, %72 : vector<2x4xf32>
    %cst_33 = arith.constant 1.000000e-10 : f32
    %74 = vector.broadcast %cst_33 : f32 to vector<2x4xf32>
    %75 = arith.addf %73, %74 : vector<2x4xf32>
    %76 = arith.addf %54, %62 : vector<2x4xf32>
    %77 = arith.addf %55, %75 : vector<2x4xf32>
    %c3 = arith.constant 3 : index
    %c0_34 = arith.constant 0 : index
    %c0_35 = arith.constant 0 : index
    %78 = vector.load %arg6[%c3, %c0_34, %c0_35] : memref<20x2x128xf32, #tpu.memory_space<vmem>>, vector<1x2x128xf32>
    %79 = vector.shape_cast %78 : vector<1x2x128xf32> to vector<2x128xf32>
    %80 = arith.mulf %7, %79 : vector<2x128xf32>
    %cst_36 = arith.constant dense<0.000000e+00> : vector<2x8xf32>
    %81 = tpu.matmul %80, %8, %cst_36 {dimension_numbers = #tpu.dot_dimension_numbers<[1], [0], [0], [1], [0, 0, 1, 1], [], []>} : vector<2x128xf32>, vector<128x8xf32>, vector<2x8xf32> -> vector<2x8xf32>
    %82 = vector.broadcast %9 : vector<1x8xf32> to vector<2x8xf32>
    %83 = arith.addf %81, %82 : vector<2x8xf32>
    %84 = vector.extract_strided_slice %83 {offsets = [0, 0], sizes = [2, 4], strides = [1, 1]} : vector<2x8xf32> to vector<2x4xf32>
    %85 = vector.extract_strided_slice %83 {offsets = [0, 4], sizes = [2, 4], strides = [1, 1]} : vector<2x8xf32> to vector<2x4xf32>
    %cst_37 = arith.constant 0.000000e+00 : f32
    %86 = vector.broadcast %cst_37 : f32 to vector<2x4xf32>
    %87 = arith.maximumf %85, %86 : vector<2x4xf32>
    %88 = math.absf %85 : vector<2x4xf32>
    %cst_38 = arith.constant 0.000000e+00 : f32
    %89 = vector.broadcast %cst_38 : f32 to vector<2x4xf32>
    %90 = arith.subf %89, %88 : vector<2x4xf32>
    %91 = math.exp %90 : vector<2x4xf32>
    %cst_39 = arith.constant 1.000000e+00 : f32
    %92 = vector.broadcast %cst_39 : f32 to vector<2x4xf32>
    %93 = arith.addf %92, %91 : vector<2x4xf32>
    %94 = math.log %93 : vector<2x4xf32>
    %95 = arith.addf %87, %94 : vector<2x4xf32>
    %cst_40 = arith.constant 1.000000e-10 : f32
    %96 = vector.broadcast %cst_40 : f32 to vector<2x4xf32>
    %97 = arith.addf %95, %96 : vector<2x4xf32>
    %98 = arith.addf %76, %84 : vector<2x4xf32>
    %99 = arith.addf %77, %97 : vector<2x4xf32>
    %c4 = arith.constant 4 : index
    %c0_41 = arith.constant 0 : index
    %c0_42 = arith.constant 0 : index
    %100 = vector.load %arg6[%c4, %c0_41, %c0_42] : memref<20x2x128xf32, #tpu.memory_space<vmem>>, vector<1x2x128xf32>
    %101 = vector.shape_cast %100 : vector<1x2x128xf32> to vector<2x128xf32>
    %102 = arith.mulf %7, %101 : vector<2x128xf32>
    %cst_43 = arith.constant dense<0.000000e+00> : vector<2x8xf32>
    %103 = tpu.matmul %102, %8, %cst_43 {dimension_numbers = #tpu.dot_dimension_numbers<[1], [0], [0], [1], [0, 0, 1, 1], [], []>} : vector<2x128xf32>, vector<128x8xf32>, vector<2x8xf32> -> vector<2x8xf32>
    %104 = vector.broadcast %9 : vector<1x8xf32> to vector<2x8xf32>
    %105 = arith.addf %103, %104 : vector<2x8xf32>
    %106 = vector.extract_strided_slice %105 {offsets = [0, 0], sizes = [2, 4], strides = [1, 1]} : vector<2x8xf32> to vector<2x4xf32>
    %107 = vector.extract_strided_slice %105 {offsets = [0, 4], sizes = [2, 4], strides = [1, 1]} : vector<2x8xf32> to vector<2x4xf32>
    %cst_44 = arith.constant 0.000000e+00 : f32
    %108 = vector.broadcast %cst_44 : f32 to vector<2x4xf32>
    %109 = arith.maximumf %107, %108 : vector<2x4xf32>
    %110 = math.absf %107 : vector<2x4xf32>
    %cst_45 = arith.constant 0.000000e+00 : f32
    %111 = vector.broadcast %cst_45 : f32 to vector<2x4xf32>
    %112 = arith.subf %111, %110 : vector<2x4xf32>
    %113 = math.exp %112 : vector<2x4xf32>
    %cst_46 = arith.constant 1.000000e+00 : f32
    %114 = vector.broadcast %cst_46 : f32 to vector<2x4xf32>
    %115 = arith.addf %114, %113 : vector<2x4xf32>
    %116 = math.log %115 : vector<2x4xf32>
    %117 = arith.addf %109, %116 : vector<2x4xf32>
    %cst_47 = arith.constant 1.000000e-10 : f32
    %118 = vector.broadcast %cst_47 : f32 to vector<2x4xf32>
    %119 = arith.addf %117, %118 : vector<2x4xf32>
    %120 = arith.addf %98, %106 : vector<2x4xf32>
    %121 = arith.addf %99, %119 : vector<2x4xf32>
    %c5 = arith.constant 5 : index
    %c0_48 = arith.constant 0 : index
    %c0_49 = arith.constant 0 : index
    %122 = vector.load %arg6[%c5, %c0_48, %c0_49] : memref<20x2x128xf32, #tpu.memory_space<vmem>>, vector<1x2x128xf32>
    %123 = vector.shape_cast %122 : vector<1x2x128xf32> to vector<2x128xf32>
    %124 = arith.mulf %7, %123 : vector<2x128xf32>
    %cst_50 = arith.constant dense<0.000000e+00> : vector<2x8xf32>
    %125 = tpu.matmul %124, %8, %cst_50 {dimension_numbers = #tpu.dot_dimension_numbers<[1], [0], [0], [1], [0, 0, 1, 1], [], []>} : vector<2x128xf32>, vector<128x8xf32>, vector<2x8xf32> -> vector<2x8xf32>
    %126 = vector.broadcast %9 : vector<1x8xf32> to vector<2x8xf32>
    %127 = arith.addf %125, %126 : vector<2x8xf32>
    %128 = vector.extract_strided_slice %127 {offsets = [0, 0], sizes = [2, 4], strides = [1, 1]} : vector<2x8xf32> to vector<2x4xf32>
    %129 = vector.extract_strided_slice %127 {offsets = [0, 4], sizes = [2, 4], strides = [1, 1]} : vector<2x8xf32> to vector<2x4xf32>
    %cst_51 = arith.constant 0.000000e+00 : f32
    %130 = vector.broadcast %cst_51 : f32 to vector<2x4xf32>
    %131 = arith.maximumf %129, %130 : vector<2x4xf32>
    %132 = math.absf %129 : vector<2x4xf32>
    %cst_52 = arith.constant 0.000000e+00 : f32
    %133 = vector.broadcast %cst_52 : f32 to vector<2x4xf32>
    %134 = arith.subf %133, %132 : vector<2x4xf32>
    %135 = math.exp %134 : vector<2x4xf32>
    %cst_53 = arith.constant 1.000000e+00 : f32
    %136 = vector.broadcast %cst_53 : f32 to vector<2x4xf32>
    %137 = arith.addf %136, %135 : vector<2x4xf32>
    %138 = math.log %137 : vector<2x4xf32>
    %139 = arith.addf %131, %138 : vector<2x4xf32>
    %cst_54 = arith.constant 1.000000e-10 : f32
    %140 = vector.broadcast %cst_54 : f32 to vector<2x4xf32>
    %141 = arith.addf %139, %140 : vector<2x4xf32>
    %142 = arith.addf %120, %128 : vector<2x4xf32>
    %143 = arith.addf %121, %141 : vector<2x4xf32>
    %c6 = arith.constant 6 : index
    %c0_55 = arith.constant 0 : index
    %c0_56 = arith.constant 0 : index
    %144 = vector.load %arg6[%c6, %c0_55, %c0_56] : memref<20x2x128xf32, #tpu.memory_space<vmem>>, vector<1x2x128xf32>
    %145 = vector.shape_cast %144 : vector<1x2x128xf32> to vector<2x128xf32>
    %146 = arith.mulf %7, %145 : vector<2x128xf32>
    %cst_57 = arith.constant dense<0.000000e+00> : vector<2x8xf32>
    %147 = tpu.matmul %146, %8, %cst_57 {dimension_numbers = #tpu.dot_dimension_numbers<[1], [0], [0], [1], [0, 0, 1, 1], [], []>} : vector<2x128xf32>, vector<128x8xf32>, vector<2x8xf32> -> vector<2x8xf32>
    %148 = vector.broadcast %9 : vector<1x8xf32> to vector<2x8xf32>
    %149 = arith.addf %147, %148 : vector<2x8xf32>
    %150 = vector.extract_strided_slice %149 {offsets = [0, 0], sizes = [2, 4], strides = [1, 1]} : vector<2x8xf32> to vector<2x4xf32>
    %151 = vector.extract_strided_slice %149 {offsets = [0, 4], sizes = [2, 4], strides = [1, 1]} : vector<2x8xf32> to vector<2x4xf32>
    %cst_58 = arith.constant 0.000000e+00 : f32
    %152 = vector.broadcast %cst_58 : f32 to vector<2x4xf32>
    %153 = arith.maximumf %151, %152 : vector<2x4xf32>
    %154 = math.absf %151 : vector<2x4xf32>
    %cst_59 = arith.constant 0.000000e+00 : f32
    %155 = vector.broadcast %cst_59 : f32 to vector<2x4xf32>
    %156 = arith.subf %155, %154 : vector<2x4xf32>
    %157 = math.exp %156 : vector<2x4xf32>
    %cst_60 = arith.constant 1.000000e+00 : f32
    %158 = vector.broadcast %cst_60 : f32 to vector<2x4xf32>
    %159 = arith.addf %158, %157 : vector<2x4xf32>
    %160 = math.log %159 : vector<2x4xf32>
    %161 = arith.addf %153, %160 : vector<2x4xf32>
    %cst_61 = arith.constant 1.000000e-10 : f32
    %162 = vector.broadcast %cst_61 : f32 to vector<2x4xf32>
    %163 = arith.addf %161, %162 : vector<2x4xf32>
    %164 = arith.addf %142, %150 : vector<2x4xf32>
    %165 = arith.addf %143, %163 : vector<2x4xf32>
    %c7 = arith.constant 7 : index
    %c0_62 = arith.constant 0 : index
    %c0_63 = arith.constant 0 : index
    %166 = vector.load %arg6[%c7, %c0_62, %c0_63] : memref<20x2x128xf32, #tpu.memory_space<vmem>>, vector<1x2x128xf32>
    %167 = vector.shape_cast %166 : vector<1x2x128xf32> to vector<2x128xf32>
    %168 = arith.mulf %7, %167 : vector<2x128xf32>
    %cst_64 = arith.constant dense<0.000000e+00> : vector<2x8xf32>
    %169 = tpu.matmul %168, %8, %cst_64 {dimension_numbers = #tpu.dot_dimension_numbers<[1], [0], [0], [1], [0, 0, 1, 1], [], []>} : vector<2x128xf32>, vector<128x8xf32>, vector<2x8xf32> -> vector<2x8xf32>
    %170 = vector.broadcast %9 : vector<1x8xf32> to vector<2x8xf32>
    %171 = arith.addf %169, %170 : vector<2x8xf32>
    %172 = vector.extract_strided_slice %171 {offsets = [0, 0], sizes = [2, 4], strides = [1, 1]} : vector<2x8xf32> to vector<2x4xf32>
    %173 = vector.extract_strided_slice %171 {offsets = [0, 4], sizes = [2, 4], strides = [1, 1]} : vector<2x8xf32> to vector<2x4xf32>
    %cst_65 = arith.constant 0.000000e+00 : f32
    %174 = vector.broadcast %cst_65 : f32 to vector<2x4xf32>
    %175 = arith.maximumf %173, %174 : vector<2x4xf32>
    %176 = math.absf %173 : vector<2x4xf32>
    %cst_66 = arith.constant 0.000000e+00 : f32
    %177 = vector.broadcast %cst_66 : f32 to vector<2x4xf32>
    %178 = arith.subf %177, %176 : vector<2x4xf32>
    %179 = math.exp %178 : vector<2x4xf32>
    %cst_67 = arith.constant 1.000000e+00 : f32
    %180 = vector.broadcast %cst_67 : f32 to vector<2x4xf32>
    %181 = arith.addf %180, %179 : vector<2x4xf32>
    %182 = math.log %181 : vector<2x4xf32>
    %183 = arith.addf %175, %182 : vector<2x4xf32>
    %cst_68 = arith.constant 1.000000e-10 : f32
    %184 = vector.broadcast %cst_68 : f32 to vector<2x4xf32>
    %185 = arith.addf %183, %184 : vector<2x4xf32>
    %186 = arith.addf %164, %172 : vector<2x4xf32>
    %187 = arith.addf %165, %185 : vector<2x4xf32>
    %c8 = arith.constant 8 : index
    %c0_69 = arith.constant 0 : index
    %c0_70 = arith.constant 0 : index
    %188 = vector.load %arg6[%c8, %c0_69, %c0_70] : memref<20x2x128xf32, #tpu.memory_space<vmem>>, vector<1x2x128xf32>
    %189 = vector.shape_cast %188 : vector<1x2x128xf32> to vector<2x128xf32>
    %190 = arith.mulf %7, %189 : vector<2x128xf32>
    %cst_71 = arith.constant dense<0.000000e+00> : vector<2x8xf32>
    %191 = tpu.matmul %190, %8, %cst_71 {dimension_numbers = #tpu.dot_dimension_numbers<[1], [0], [0], [1], [0, 0, 1, 1], [], []>} : vector<2x128xf32>, vector<128x8xf32>, vector<2x8xf32> -> vector<2x8xf32>
    %192 = vector.broadcast %9 : vector<1x8xf32> to vector<2x8xf32>
    %193 = arith.addf %191, %192 : vector<2x8xf32>
    %194 = vector.extract_strided_slice %193 {offsets = [0, 0], sizes = [2, 4], strides = [1, 1]} : vector<2x8xf32> to vector<2x4xf32>
    %195 = vector.extract_strided_slice %193 {offsets = [0, 4], sizes = [2, 4], strides = [1, 1]} : vector<2x8xf32> to vector<2x4xf32>
    %cst_72 = arith.constant 0.000000e+00 : f32
    %196 = vector.broadcast %cst_72 : f32 to vector<2x4xf32>
    %197 = arith.maximumf %195, %196 : vector<2x4xf32>
    %198 = math.absf %195 : vector<2x4xf32>
    %cst_73 = arith.constant 0.000000e+00 : f32
    %199 = vector.broadcast %cst_73 : f32 to vector<2x4xf32>
    %200 = arith.subf %199, %198 : vector<2x4xf32>
    %201 = math.exp %200 : vector<2x4xf32>
    %cst_74 = arith.constant 1.000000e+00 : f32
    %202 = vector.broadcast %cst_74 : f32 to vector<2x4xf32>
    %203 = arith.addf %202, %201 : vector<2x4xf32>
    %204 = math.log %203 : vector<2x4xf32>
    %205 = arith.addf %197, %204 : vector<2x4xf32>
    %cst_75 = arith.constant 1.000000e-10 : f32
    %206 = vector.broadcast %cst_75 : f32 to vector<2x4xf32>
    %207 = arith.addf %205, %206 : vector<2x4xf32>
    %208 = arith.addf %186, %194 : vector<2x4xf32>
    %209 = arith.addf %187, %207 : vector<2x4xf32>
    %c9 = arith.constant 9 : index
    %c0_76 = arith.constant 0 : index
    %c0_77 = arith.constant 0 : index
    %210 = vector.load %arg6[%c9, %c0_76, %c0_77] : memref<20x2x128xf32, #tpu.memory_space<vmem>>, vector<1x2x128xf32>
    %211 = vector.shape_cast %210 : vector<1x2x128xf32> to vector<2x128xf32>
    %212 = arith.mulf %7, %211 : vector<2x128xf32>
    %cst_78 = arith.constant dense<0.000000e+00> : vector<2x8xf32>
    %213 = tpu.matmul %212, %8, %cst_78 {dimension_numbers = #tpu.dot_dimension_numbers<[1], [0], [0], [1], [0, 0, 1, 1], [], []>} : vector<2x128xf32>, vector<128x8xf32>, vector<2x8xf32> -> vector<2x8xf32>
    %214 = vector.broadcast %9 : vector<1x8xf32> to vector<2x8xf32>
    %215 = arith.addf %213, %214 : vector<2x8xf32>
    %216 = vector.extract_strided_slice %215 {offsets = [0, 0], sizes = [2, 4], strides = [1, 1]} : vector<2x8xf32> to vector<2x4xf32>
    %217 = vector.extract_strided_slice %215 {offsets = [0, 4], sizes = [2, 4], strides = [1, 1]} : vector<2x8xf32> to vector<2x4xf32>
    %cst_79 = arith.constant 0.000000e+00 : f32
    %218 = vector.broadcast %cst_79 : f32 to vector<2x4xf32>
    %219 = arith.maximumf %217, %218 : vector<2x4xf32>
    %220 = math.absf %217 : vector<2x4xf32>
    %cst_80 = arith.constant 0.000000e+00 : f32
    %221 = vector.broadcast %cst_80 : f32 to vector<2x4xf32>
    %222 = arith.subf %221, %220 : vector<2x4xf32>
    %223 = math.exp %222 : vector<2x4xf32>
    %cst_81 = arith.constant 1.000000e+00 : f32
    %224 = vector.broadcast %cst_81 : f32 to vector<2x4xf32>
    %225 = arith.addf %224, %223 : vector<2x4xf32>
    %226 = math.log %225 : vector<2x4xf32>
    %227 = arith.addf %219, %226 : vector<2x4xf32>
    %cst_82 = arith.constant 1.000000e-10 : f32
    %228 = vector.broadcast %cst_82 : f32 to vector<2x4xf32>
    %229 = arith.addf %227, %228 : vector<2x4xf32>
    %230 = arith.addf %208, %216 : vector<2x4xf32>
    %231 = arith.addf %209, %229 : vector<2x4xf32>
    %c10 = arith.constant 10 : index
    %c0_83 = arith.constant 0 : index
    %c0_84 = arith.constant 0 : index
    %232 = vector.load %arg6[%c10, %c0_83, %c0_84] : memref<20x2x128xf32, #tpu.memory_space<vmem>>, vector<1x2x128xf32>
    %233 = vector.shape_cast %232 : vector<1x2x128xf32> to vector<2x128xf32>
    %234 = arith.mulf %7, %233 : vector<2x128xf32>
    %cst_85 = arith.constant dense<0.000000e+00> : vector<2x8xf32>
    %235 = tpu.matmul %234, %8, %cst_85 {dimension_numbers = #tpu.dot_dimension_numbers<[1], [0], [0], [1], [0, 0, 1, 1], [], []>} : vector<2x128xf32>, vector<128x8xf32>, vector<2x8xf32> -> vector<2x8xf32>
    %236 = vector.broadcast %9 : vector<1x8xf32> to vector<2x8xf32>
    %237 = arith.addf %235, %236 : vector<2x8xf32>
    %238 = vector.extract_strided_slice %237 {offsets = [0, 0], sizes = [2, 4], strides = [1, 1]} : vector<2x8xf32> to vector<2x4xf32>
    %239 = vector.extract_strided_slice %237 {offsets = [0, 4], sizes = [2, 4], strides = [1, 1]} : vector<2x8xf32> to vector<2x4xf32>
    %cst_86 = arith.constant 0.000000e+00 : f32
    %240 = vector.broadcast %cst_86 : f32 to vector<2x4xf32>
    %241 = arith.maximumf %239, %240 : vector<2x4xf32>
    %242 = math.absf %239 : vector<2x4xf32>
    %cst_87 = arith.constant 0.000000e+00 : f32
    %243 = vector.broadcast %cst_87 : f32 to vector<2x4xf32>
    %244 = arith.subf %243, %242 : vector<2x4xf32>
    %245 = math.exp %244 : vector<2x4xf32>
    %cst_88 = arith.constant 1.000000e+00 : f32
    %246 = vector.broadcast %cst_88 : f32 to vector<2x4xf32>
    %247 = arith.addf %246, %245 : vector<2x4xf32>
    %248 = math.log %247 : vector<2x4xf32>
    %249 = arith.addf %241, %248 : vector<2x4xf32>
    %cst_89 = arith.constant 1.000000e-10 : f32
    %250 = vector.broadcast %cst_89 : f32 to vector<2x4xf32>
    %251 = arith.addf %249, %250 : vector<2x4xf32>
    %252 = arith.addf %230, %238 : vector<2x4xf32>
    %253 = arith.addf %231, %251 : vector<2x4xf32>
    %c11 = arith.constant 11 : index
    %c0_90 = arith.constant 0 : index
    %c0_91 = arith.constant 0 : index
    %254 = vector.load %arg6[%c11, %c0_90, %c0_91] : memref<20x2x128xf32, #tpu.memory_space<vmem>>, vector<1x2x128xf32>
    %255 = vector.shape_cast %254 : vector<1x2x128xf32> to vector<2x128xf32>
    %256 = arith.mulf %7, %255 : vector<2x128xf32>
    %cst_92 = arith.constant dense<0.000000e+00> : vector<2x8xf32>
    %257 = tpu.matmul %256, %8, %cst_92 {dimension_numbers = #tpu.dot_dimension_numbers<[1], [0], [0], [1], [0, 0, 1, 1], [], []>} : vector<2x128xf32>, vector<128x8xf32>, vector<2x8xf32> -> vector<2x8xf32>
    %258 = vector.broadcast %9 : vector<1x8xf32> to vector<2x8xf32>
    %259 = arith.addf %257, %258 : vector<2x8xf32>
    %260 = vector.extract_strided_slice %259 {offsets = [0, 0], sizes = [2, 4], strides = [1, 1]} : vector<2x8xf32> to vector<2x4xf32>
    %261 = vector.extract_strided_slice %259 {offsets = [0, 4], sizes = [2, 4], strides = [1, 1]} : vector<2x8xf32> to vector<2x4xf32>
    %cst_93 = arith.constant 0.000000e+00 : f32
    %262 = vector.broadcast %cst_93 : f32 to vector<2x4xf32>
    %263 = arith.maximumf %261, %262 : vector<2x4xf32>
    %264 = math.absf %261 : vector<2x4xf32>
    %cst_94 = arith.constant 0.000000e+00 : f32
    %265 = vector.broadcast %cst_94 : f32 to vector<2x4xf32>
    %266 = arith.subf %265, %264 : vector<2x4xf32>
    %267 = math.exp %266 : vector<2x4xf32>
    %cst_95 = arith.constant 1.000000e+00 : f32
    %268 = vector.broadcast %cst_95 : f32 to vector<2x4xf32>
    %269 = arith.addf %268, %267 : vector<2x4xf32>
    %270 = math.log %269 : vector<2x4xf32>
    %271 = arith.addf %263, %270 : vector<2x4xf32>
    %cst_96 = arith.constant 1.000000e-10 : f32
    %272 = vector.broadcast %cst_96 : f32 to vector<2x4xf32>
    %273 = arith.addf %271, %272 : vector<2x4xf32>
    %274 = arith.addf %252, %260 : vector<2x4xf32>
    %275 = arith.addf %253, %273 : vector<2x4xf32>
    %c12 = arith.constant 12 : index
    %c0_97 = arith.constant 0 : index
    %c0_98 = arith.constant 0 : index
    %276 = vector.load %arg6[%c12, %c0_97, %c0_98] : memref<20x2x128xf32, #tpu.memory_space<vmem>>, vector<1x2x128xf32>
    %277 = vector.shape_cast %276 : vector<1x2x128xf32> to vector<2x128xf32>
    %278 = arith.mulf %7, %277 : vector<2x128xf32>
    %cst_99 = arith.constant dense<0.000000e+00> : vector<2x8xf32>
    %279 = tpu.matmul %278, %8, %cst_99 {dimension_numbers = #tpu.dot_dimension_numbers<[1], [0], [0], [1], [0, 0, 1, 1], [], []>} : vector<2x128xf32>, vector<128x8xf32>, vector<2x8xf32> -> vector<2x8xf32>
    %280 = vector.broadcast %9 : vector<1x8xf32> to vector<2x8xf32>
    %281 = arith.addf %279, %280 : vector<2x8xf32>
    %282 = vector.extract_strided_slice %281 {offsets = [0, 0], sizes = [2, 4], strides = [1, 1]} : vector<2x8xf32> to vector<2x4xf32>
    %283 = vector.extract_strided_slice %281 {offsets = [0, 4], sizes = [2, 4], strides = [1, 1]} : vector<2x8xf32> to vector<2x4xf32>
    %cst_100 = arith.constant 0.000000e+00 : f32
    %284 = vector.broadcast %cst_100 : f32 to vector<2x4xf32>
    %285 = arith.maximumf %283, %284 : vector<2x4xf32>
    %286 = math.absf %283 : vector<2x4xf32>
    %cst_101 = arith.constant 0.000000e+00 : f32
    %287 = vector.broadcast %cst_101 : f32 to vector<2x4xf32>
    %288 = arith.subf %287, %286 : vector<2x4xf32>
    %289 = math.exp %288 : vector<2x4xf32>
    %cst_102 = arith.constant 1.000000e+00 : f32
    %290 = vector.broadcast %cst_102 : f32 to vector<2x4xf32>
    %291 = arith.addf %290, %289 : vector<2x4xf32>
    %292 = math.log %291 : vector<2x4xf32>
    %293 = arith.addf %285, %292 : vector<2x4xf32>
    %cst_103 = arith.constant 1.000000e-10 : f32
    %294 = vector.broadcast %cst_103 : f32 to vector<2x4xf32>
    %295 = arith.addf %293, %294 : vector<2x4xf32>
    %296 = arith.addf %274, %282 : vector<2x4xf32>
    %297 = arith.addf %275, %295 : vector<2x4xf32>
    %c13 = arith.constant 13 : index
    %c0_104 = arith.constant 0 : index
    %c0_105 = arith.constant 0 : index
    %298 = vector.load %arg6[%c13, %c0_104, %c0_105] : memref<20x2x128xf32, #tpu.memory_space<vmem>>, vector<1x2x128xf32>
    %299 = vector.shape_cast %298 : vector<1x2x128xf32> to vector<2x128xf32>
    %300 = arith.mulf %7, %299 : vector<2x128xf32>
    %cst_106 = arith.constant dense<0.000000e+00> : vector<2x8xf32>
    %301 = tpu.matmul %300, %8, %cst_106 {dimension_numbers = #tpu.dot_dimension_numbers<[1], [0], [0], [1], [0, 0, 1, 1], [], []>} : vector<2x128xf32>, vector<128x8xf32>, vector<2x8xf32> -> vector<2x8xf32>
    %302 = vector.broadcast %9 : vector<1x8xf32> to vector<2x8xf32>
    %303 = arith.addf %301, %302 : vector<2x8xf32>
    %304 = vector.extract_strided_slice %303 {offsets = [0, 0], sizes = [2, 4], strides = [1, 1]} : vector<2x8xf32> to vector<2x4xf32>
    %305 = vector.extract_strided_slice %303 {offsets = [0, 4], sizes = [2, 4], strides = [1, 1]} : vector<2x8xf32> to vector<2x4xf32>
    %cst_107 = arith.constant 0.000000e+00 : f32
    %306 = vector.broadcast %cst_107 : f32 to vector<2x4xf32>
    %307 = arith.maximumf %305, %306 : vector<2x4xf32>
    %308 = math.absf %305 : vector<2x4xf32>
    %cst_108 = arith.constant 0.000000e+00 : f32
    %309 = vector.broadcast %cst_108 : f32 to vector<2x4xf32>
    %310 = arith.subf %309, %308 : vector<2x4xf32>
    %311 = math.exp %310 : vector<2x4xf32>
    %cst_109 = arith.constant 1.000000e+00 : f32
    %312 = vector.broadcast %cst_109 : f32 to vector<2x4xf32>
    %313 = arith.addf %312, %311 : vector<2x4xf32>
    %314 = math.log %313 : vector<2x4xf32>
    %315 = arith.addf %307, %314 : vector<2x4xf32>
    %cst_110 = arith.constant 1.000000e-10 : f32
    %316 = vector.broadcast %cst_110 : f32 to vector<2x4xf32>
    %317 = arith.addf %315, %316 : vector<2x4xf32>
    %318 = arith.addf %296, %304 : vector<2x4xf32>
    %319 = arith.addf %297, %317 : vector<2x4xf32>
    %c14 = arith.constant 14 : index
    %c0_111 = arith.constant 0 : index
    %c0_112 = arith.constant 0 : index
    %320 = vector.load %arg6[%c14, %c0_111, %c0_112] : memref<20x2x128xf32, #tpu.memory_space<vmem>>, vector<1x2x128xf32>
    %321 = vector.shape_cast %320 : vector<1x2x128xf32> to vector<2x128xf32>
    %322 = arith.mulf %7, %321 : vector<2x128xf32>
    %cst_113 = arith.constant dense<0.000000e+00> : vector<2x8xf32>
    %323 = tpu.matmul %322, %8, %cst_113 {dimension_numbers = #tpu.dot_dimension_numbers<[1], [0], [0], [1], [0, 0, 1, 1], [], []>} : vector<2x128xf32>, vector<128x8xf32>, vector<2x8xf32> -> vector<2x8xf32>
    %324 = vector.broadcast %9 : vector<1x8xf32> to vector<2x8xf32>
    %325 = arith.addf %323, %324 : vector<2x8xf32>
    %326 = vector.extract_strided_slice %325 {offsets = [0, 0], sizes = [2, 4], strides = [1, 1]} : vector<2x8xf32> to vector<2x4xf32>
    %327 = vector.extract_strided_slice %325 {offsets = [0, 4], sizes = [2, 4], strides = [1, 1]} : vector<2x8xf32> to vector<2x4xf32>
    %cst_114 = arith.constant 0.000000e+00 : f32
    %328 = vector.broadcast %cst_114 : f32 to vector<2x4xf32>
    %329 = arith.maximumf %327, %328 : vector<2x4xf32>
    %330 = math.absf %327 : vector<2x4xf32>
    %cst_115 = arith.constant 0.000000e+00 : f32
    %331 = vector.broadcast %cst_115 : f32 to vector<2x4xf32>
    %332 = arith.subf %331, %330 : vector<2x4xf32>
    %333 = math.exp %332 : vector<2x4xf32>
    %cst_116 = arith.constant 1.000000e+00 : f32
    %334 = vector.broadcast %cst_116 : f32 to vector<2x4xf32>
    %335 = arith.addf %334, %333 : vector<2x4xf32>
    %336 = math.log %335 : vector<2x4xf32>
    %337 = arith.addf %329, %336 : vector<2x4xf32>
    %cst_117 = arith.constant 1.000000e-10 : f32
    %338 = vector.broadcast %cst_117 : f32 to vector<2x4xf32>
    %339 = arith.addf %337, %338 : vector<2x4xf32>
    %340 = arith.addf %318, %326 : vector<2x4xf32>
    %341 = arith.addf %319, %339 : vector<2x4xf32>
    %c15 = arith.constant 15 : index
    %c0_118 = arith.constant 0 : index
    %c0_119 = arith.constant 0 : index
    %342 = vector.load %arg6[%c15, %c0_118, %c0_119] : memref<20x2x128xf32, #tpu.memory_space<vmem>>, vector<1x2x128xf32>
    %343 = vector.shape_cast %342 : vector<1x2x128xf32> to vector<2x128xf32>
    %344 = arith.mulf %7, %343 : vector<2x128xf32>
    %cst_120 = arith.constant dense<0.000000e+00> : vector<2x8xf32>
    %345 = tpu.matmul %344, %8, %cst_120 {dimension_numbers = #tpu.dot_dimension_numbers<[1], [0], [0], [1], [0, 0, 1, 1], [], []>} : vector<2x128xf32>, vector<128x8xf32>, vector<2x8xf32> -> vector<2x8xf32>
    %346 = vector.broadcast %9 : vector<1x8xf32> to vector<2x8xf32>
    %347 = arith.addf %345, %346 : vector<2x8xf32>
    %348 = vector.extract_strided_slice %347 {offsets = [0, 0], sizes = [2, 4], strides = [1, 1]} : vector<2x8xf32> to vector<2x4xf32>
    %349 = vector.extract_strided_slice %347 {offsets = [0, 4], sizes = [2, 4], strides = [1, 1]} : vector<2x8xf32> to vector<2x4xf32>
    %cst_121 = arith.constant 0.000000e+00 : f32
    %350 = vector.broadcast %cst_121 : f32 to vector<2x4xf32>
    %351 = arith.maximumf %349, %350 : vector<2x4xf32>
    %352 = math.absf %349 : vector<2x4xf32>
    %cst_122 = arith.constant 0.000000e+00 : f32
    %353 = vector.broadcast %cst_122 : f32 to vector<2x4xf32>
    %354 = arith.subf %353, %352 : vector<2x4xf32>
    %355 = math.exp %354 : vector<2x4xf32>
    %cst_123 = arith.constant 1.000000e+00 : f32
    %356 = vector.broadcast %cst_123 : f32 to vector<2x4xf32>
    %357 = arith.addf %356, %355 : vector<2x4xf32>
    %358 = math.log %357 : vector<2x4xf32>
    %359 = arith.addf %351, %358 : vector<2x4xf32>
    %cst_124 = arith.constant 1.000000e-10 : f32
    %360 = vector.broadcast %cst_124 : f32 to vector<2x4xf32>
    %361 = arith.addf %359, %360 : vector<2x4xf32>
    %362 = arith.addf %340, %348 : vector<2x4xf32>
    %363 = arith.addf %341, %361 : vector<2x4xf32>
    %c16 = arith.constant 16 : index
    %c0_125 = arith.constant 0 : index
    %c0_126 = arith.constant 0 : index
    %364 = vector.load %arg6[%c16, %c0_125, %c0_126] : memref<20x2x128xf32, #tpu.memory_space<vmem>>, vector<1x2x128xf32>
    %365 = vector.shape_cast %364 : vector<1x2x128xf32> to vector<2x128xf32>
    %366 = arith.mulf %7, %365 : vector<2x128xf32>
    %cst_127 = arith.constant dense<0.000000e+00> : vector<2x8xf32>
    %367 = tpu.matmul %366, %8, %cst_127 {dimension_numbers = #tpu.dot_dimension_numbers<[1], [0], [0], [1], [0, 0, 1, 1], [], []>} : vector<2x128xf32>, vector<128x8xf32>, vector<2x8xf32> -> vector<2x8xf32>
    %368 = vector.broadcast %9 : vector<1x8xf32> to vector<2x8xf32>
    %369 = arith.addf %367, %368 : vector<2x8xf32>
    %370 = vector.extract_strided_slice %369 {offsets = [0, 0], sizes = [2, 4], strides = [1, 1]} : vector<2x8xf32> to vector<2x4xf32>
    %371 = vector.extract_strided_slice %369 {offsets = [0, 4], sizes = [2, 4], strides = [1, 1]} : vector<2x8xf32> to vector<2x4xf32>
    %cst_128 = arith.constant 0.000000e+00 : f32
    %372 = vector.broadcast %cst_128 : f32 to vector<2x4xf32>
    %373 = arith.maximumf %371, %372 : vector<2x4xf32>
    %374 = math.absf %371 : vector<2x4xf32>
    %cst_129 = arith.constant 0.000000e+00 : f32
    %375 = vector.broadcast %cst_129 : f32 to vector<2x4xf32>
    %376 = arith.subf %375, %374 : vector<2x4xf32>
    %377 = math.exp %376 : vector<2x4xf32>
    %cst_130 = arith.constant 1.000000e+00 : f32
    %378 = vector.broadcast %cst_130 : f32 to vector<2x4xf32>
    %379 = arith.addf %378, %377 : vector<2x4xf32>
    %380 = math.log %379 : vector<2x4xf32>
    %381 = arith.addf %373, %380 : vector<2x4xf32>
    %cst_131 = arith.constant 1.000000e-10 : f32
    %382 = vector.broadcast %cst_131 : f32 to vector<2x4xf32>
    %383 = arith.addf %381, %382 : vector<2x4xf32>
    %384 = arith.addf %362, %370 : vector<2x4xf32>
    %385 = arith.addf %363, %383 : vector<2x4xf32>
    %c17 = arith.constant 17 : index
    %c0_132 = arith.constant 0 : index
    %c0_133 = arith.constant 0 : index
    %386 = vector.load %arg6[%c17, %c0_132, %c0_133] : memref<20x2x128xf32, #tpu.memory_space<vmem>>, vector<1x2x128xf32>
    %387 = vector.shape_cast %386 : vector<1x2x128xf32> to vector<2x128xf32>
    %388 = arith.mulf %7, %387 : vector<2x128xf32>
    %cst_134 = arith.constant dense<0.000000e+00> : vector<2x8xf32>
    %389 = tpu.matmul %388, %8, %cst_134 {dimension_numbers = #tpu.dot_dimension_numbers<[1], [0], [0], [1], [0, 0, 1, 1], [], []>} : vector<2x128xf32>, vector<128x8xf32>, vector<2x8xf32> -> vector<2x8xf32>
    %390 = vector.broadcast %9 : vector<1x8xf32> to vector<2x8xf32>
    %391 = arith.addf %389, %390 : vector<2x8xf32>
    %392 = vector.extract_strided_slice %391 {offsets = [0, 0], sizes = [2, 4], strides = [1, 1]} : vector<2x8xf32> to vector<2x4xf32>
    %393 = vector.extract_strided_slice %391 {offsets = [0, 4], sizes = [2, 4], strides = [1, 1]} : vector<2x8xf32> to vector<2x4xf32>
    %cst_135 = arith.constant 0.000000e+00 : f32
    %394 = vector.broadcast %cst_135 : f32 to vector<2x4xf32>
    %395 = arith.maximumf %393, %394 : vector<2x4xf32>
    %396 = math.absf %393 : vector<2x4xf32>
    %cst_136 = arith.constant 0.000000e+00 : f32
    %397 = vector.broadcast %cst_136 : f32 to vector<2x4xf32>
    %398 = arith.subf %397, %396 : vector<2x4xf32>
    %399 = math.exp %398 : vector<2x4xf32>
    %cst_137 = arith.constant 1.000000e+00 : f32
    %400 = vector.broadcast %cst_137 : f32 to vector<2x4xf32>
    %401 = arith.addf %400, %399 : vector<2x4xf32>
    %402 = math.log %401 : vector<2x4xf32>
    %403 = arith.addf %395, %402 : vector<2x4xf32>
    %cst_138 = arith.constant 1.000000e-10 : f32
    %404 = vector.broadcast %cst_138 : f32 to vector<2x4xf32>
    %405 = arith.addf %403, %404 : vector<2x4xf32>
    %406 = arith.addf %384, %392 : vector<2x4xf32>
    %407 = arith.addf %385, %405 : vector<2x4xf32>
    %c18 = arith.constant 18 : index
    %c0_139 = arith.constant 0 : index
    %c0_140 = arith.constant 0 : index
    %408 = vector.load %arg6[%c18, %c0_139, %c0_140] : memref<20x2x128xf32, #tpu.memory_space<vmem>>, vector<1x2x128xf32>
    %409 = vector.shape_cast %408 : vector<1x2x128xf32> to vector<2x128xf32>
    %410 = arith.mulf %7, %409 : vector<2x128xf32>
    %cst_141 = arith.constant dense<0.000000e+00> : vector<2x8xf32>
    %411 = tpu.matmul %410, %8, %cst_141 {dimension_numbers = #tpu.dot_dimension_numbers<[1], [0], [0], [1], [0, 0, 1, 1], [], []>} : vector<2x128xf32>, vector<128x8xf32>, vector<2x8xf32> -> vector<2x8xf32>
    %412 = vector.broadcast %9 : vector<1x8xf32> to vector<2x8xf32>
    %413 = arith.addf %411, %412 : vector<2x8xf32>
    %414 = vector.extract_strided_slice %413 {offsets = [0, 0], sizes = [2, 4], strides = [1, 1]} : vector<2x8xf32> to vector<2x4xf32>
    %415 = vector.extract_strided_slice %413 {offsets = [0, 4], sizes = [2, 4], strides = [1, 1]} : vector<2x8xf32> to vector<2x4xf32>
    %cst_142 = arith.constant 0.000000e+00 : f32
    %416 = vector.broadcast %cst_142 : f32 to vector<2x4xf32>
    %417 = arith.maximumf %415, %416 : vector<2x4xf32>
    %418 = math.absf %415 : vector<2x4xf32>
    %cst_143 = arith.constant 0.000000e+00 : f32
    %419 = vector.broadcast %cst_143 : f32 to vector<2x4xf32>
    %420 = arith.subf %419, %418 : vector<2x4xf32>
    %421 = math.exp %420 : vector<2x4xf32>
    %cst_144 = arith.constant 1.000000e+00 : f32
    %422 = vector.broadcast %cst_144 : f32 to vector<2x4xf32>
    %423 = arith.addf %422, %421 : vector<2x4xf32>
    %424 = math.log %423 : vector<2x4xf32>
    %425 = arith.addf %417, %424 : vector<2x4xf32>
    %cst_145 = arith.constant 1.000000e-10 : f32
    %426 = vector.broadcast %cst_145 : f32 to vector<2x4xf32>
    %427 = arith.addf %425, %426 : vector<2x4xf32>
    %428 = arith.addf %406, %414 : vector<2x4xf32>
    %429 = arith.addf %407, %427 : vector<2x4xf32>
    %c19 = arith.constant 19 : index
    %c0_146 = arith.constant 0 : index
    %c0_147 = arith.constant 0 : index
    %430 = vector.load %arg6[%c19, %c0_146, %c0_147] : memref<20x2x128xf32, #tpu.memory_space<vmem>>, vector<1x2x128xf32>
    %431 = vector.shape_cast %430 : vector<1x2x128xf32> to vector<2x128xf32>
    %432 = arith.mulf %7, %431 : vector<2x128xf32>
    %cst_148 = arith.constant dense<0.000000e+00> : vector<2x8xf32>
    %433 = tpu.matmul %432, %8, %cst_148 {dimension_numbers = #tpu.dot_dimension_numbers<[1], [0], [0], [1], [0, 0, 1, 1], [], []>} : vector<2x128xf32>, vector<128x8xf32>, vector<2x8xf32> -> vector<2x8xf32>
    %434 = vector.broadcast %9 : vector<1x8xf32> to vector<2x8xf32>
    %435 = arith.addf %433, %434 : vector<2x8xf32>
    %436 = vector.extract_strided_slice %435 {offsets = [0, 0], sizes = [2, 4], strides = [1, 1]} : vector<2x8xf32> to vector<2x4xf32>
    %437 = vector.extract_strided_slice %435 {offsets = [0, 4], sizes = [2, 4], strides = [1, 1]} : vector<2x8xf32> to vector<2x4xf32>
    %cst_149 = arith.constant 0.000000e+00 : f32
    %438 = vector.broadcast %cst_149 : f32 to vector<2x4xf32>
    %439 = arith.maximumf %437, %438 : vector<2x4xf32>
    %440 = math.absf %437 : vector<2x4xf32>
    %cst_150 = arith.constant 0.000000e+00 : f32
    %441 = vector.broadcast %cst_150 : f32 to vector<2x4xf32>
    %442 = arith.subf %441, %440 : vector<2x4xf32>
    %443 = math.exp %442 : vector<2x4xf32>
    %cst_151 = arith.constant 1.000000e+00 : f32
    %444 = vector.broadcast %cst_151 : f32 to vector<2x4xf32>
    %445 = arith.addf %444, %443 : vector<2x4xf32>
    %446 = math.log %445 : vector<2x4xf32>
    %447 = arith.addf %439, %446 : vector<2x4xf32>
    %cst_152 = arith.constant 1.000000e-10 : f32
    %448 = vector.broadcast %cst_152 : f32 to vector<2x4xf32>
    %449 = arith.addf %447, %448 : vector<2x4xf32>
    %450 = arith.addf %428, %436 : vector<2x4xf32>
    %451 = arith.addf %429, %449 : vector<2x4xf32>
    %cst_153 = arith.constant 5.000000e-02 : f32
    %452 = vector.broadcast %cst_153 : f32 to vector<2x4xf32>
    %453 = arith.mulf %450, %452 : vector<2x4xf32>
    %cst_154 = arith.constant 5.000000e-02 : f32
    %454 = vector.broadcast %cst_154 : f32 to vector<2x4xf32>
    %455 = arith.mulf %451, %454 : vector<2x4xf32>
    %cst_155 = arith.constant 0.000000e+00 : f32
    %456 = vector.broadcast %cst_155 : f32 to vector<2x4xf32>
    %457 = arith.subf %18, %453 : vector<2x4xf32>
    %458 = arith.mulf %457, %457 : vector<2x4xf32>
    %459 = arith.addf %456, %458 : vector<2x4xf32>
    %460 = arith.subf %40, %453 : vector<2x4xf32>
    %461 = arith.mulf %460, %460 : vector<2x4xf32>
    %462 = arith.addf %459, %461 : vector<2x4xf32>
    %463 = arith.subf %62, %453 : vector<2x4xf32>
    %464 = arith.mulf %463, %463 : vector<2x4xf32>
    %465 = arith.addf %462, %464 : vector<2x4xf32>
    %466 = arith.subf %84, %453 : vector<2x4xf32>
    %467 = arith.mulf %466, %466 : vector<2x4xf32>
    %468 = arith.addf %465, %467 : vector<2x4xf32>
    %469 = arith.subf %106, %453 : vector<2x4xf32>
    %470 = arith.mulf %469, %469 : vector<2x4xf32>
    %471 = arith.addf %468, %470 : vector<2x4xf32>
    %472 = arith.subf %128, %453 : vector<2x4xf32>
    %473 = arith.mulf %472, %472 : vector<2x4xf32>
    %474 = arith.addf %471, %473 : vector<2x4xf32>
    %475 = arith.subf %150, %453 : vector<2x4xf32>
    %476 = arith.mulf %475, %475 : vector<2x4xf32>
    %477 = arith.addf %474, %476 : vector<2x4xf32>
    %478 = arith.subf %172, %453 : vector<2x4xf32>
    %479 = arith.mulf %478, %478 : vector<2x4xf32>
    %480 = arith.addf %477, %479 : vector<2x4xf32>
    %481 = arith.subf %194, %453 : vector<2x4xf32>
    %482 = arith.mulf %481, %481 : vector<2x4xf32>
    %483 = arith.addf %480, %482 : vector<2x4xf32>
    %484 = arith.subf %216, %453 : vector<2x4xf32>
    %485 = arith.mulf %484, %484 : vector<2x4xf32>
    %486 = arith.addf %483, %485 : vector<2x4xf32>
    %487 = arith.subf %238, %453 : vector<2x4xf32>
    %488 = arith.mulf %487, %487 : vector<2x4xf32>
    %489 = arith.addf %486, %488 : vector<2x4xf32>
    %490 = arith.subf %260, %453 : vector<2x4xf32>
    %491 = arith.mulf %490, %490 : vector<2x4xf32>
    %492 = arith.addf %489, %491 : vector<2x4xf32>
    %493 = arith.subf %282, %453 : vector<2x4xf32>
    %494 = arith.mulf %493, %493 : vector<2x4xf32>
    %495 = arith.addf %492, %494 : vector<2x4xf32>
    %496 = arith.subf %304, %453 : vector<2x4xf32>
    %497 = arith.mulf %496, %496 : vector<2x4xf32>
    %498 = arith.addf %495, %497 : vector<2x4xf32>
    %499 = arith.subf %326, %453 : vector<2x4xf32>
    %500 = arith.mulf %499, %499 : vector<2x4xf32>
    %501 = arith.addf %498, %500 : vector<2x4xf32>
    %502 = arith.subf %348, %453 : vector<2x4xf32>
    %503 = arith.mulf %502, %502 : vector<2x4xf32>
    %504 = arith.addf %501, %503 : vector<2x4xf32>
    %505 = arith.subf %370, %453 : vector<2x4xf32>
    %506 = arith.mulf %505, %505 : vector<2x4xf32>
    %507 = arith.addf %504, %506 : vector<2x4xf32>
    %508 = arith.subf %392, %453 : vector<2x4xf32>
    %509 = arith.mulf %508, %508 : vector<2x4xf32>
    %510 = arith.addf %507, %509 : vector<2x4xf32>
    %511 = arith.subf %414, %453 : vector<2x4xf32>
    %512 = arith.mulf %511, %511 : vector<2x4xf32>
    %513 = arith.addf %510, %512 : vector<2x4xf32>
    %514 = arith.subf %436, %453 : vector<2x4xf32>
    %515 = arith.mulf %514, %514 : vector<2x4xf32>
    %516 = arith.addf %513, %515 : vector<2x4xf32>
    %cst_156 = arith.constant 0.0526315793 : f32
    %517 = vector.broadcast %cst_156 : f32 to vector<2x4xf32>
    %518 = arith.mulf %516, %517 : vector<2x4xf32>
    %c0_157 = arith.constant 0 : index
    %c0_158 = arith.constant 0 : index
    %519 = vector.load %arg7[%c0_157, %c0_158] : memref<2x12xf32, #tpu.memory_space<vmem>>, vector<2x4xf32>
    tpu.vector_store %arg7[%c0_157, %c0_158], %453 {strides = array<i32>} : memref<2x12xf32, #tpu.memory_space<vmem>>, vector<2x4xf32>,
    %c0_159 = arith.constant 0 : index
    %c4_160 = arith.constant 4 : index
    %520 = vector.load %arg7[%c0_159, %c4_160] : memref<2x12xf32, #tpu.memory_space<vmem>>, vector<2x4xf32>
    tpu.vector_store %arg7[%c0_159, %c4_160], %455 {strides = array<i32>} : memref<2x12xf32, #tpu.memory_space<vmem>>, vector<2x4xf32>,
    %c0_161 = arith.constant 0 : index
    %c8_162 = arith.constant 8 : index
    %521 = vector.load %arg7[%c0_161, %c8_162] : memref<2x12xf32, #tpu.memory_space<vmem>>, vector<2x4xf32>
    tpu.vector_store %arg7[%c0_161, %c8_162], %518 {strides = array<i32>} : memref<2x12xf32, #tpu.memory_space<vmem>>, vector<2x4xf32>,
    return
  }
  func.func @transform_0(%arg0: i32) -> (i32, i32) {
    %c0_i32 = arith.constant 0 : i32
    %c0_i32_0 = arith.constant 0 : i32
    return %arg0, %c0_i32 : i32, i32
  }
  func.func @transform_1(%arg0: i32) -> (i32, i32) {
    %c0_i32 = arith.constant 0 : i32
    %c0_i32_0 = arith.constant 0 : i32
    %c0_i32_1 = arith.constant 0 : i32
    return %c0_i32, %c0_i32_0 : i32, i32
  }
  func.func @transform_2(%arg0: i32) -> (i32, i32) {
    %c0_i32 = arith.constant 0 : i32
    %c0_i32_0 = arith.constant 0 : i32
    %c0_i32_1 = arith.constant 0 : i32
    return %c0_i32, %c0_i32_0 : i32, i32
  }
  func.func @transform_3(%arg0: i32) -> (i32, i32) {
    %c0_i32 = arith.constant 0 : i32
    %c0_i32_0 = arith.constant 0 : i32
    %c0_i32_1 = arith.constant 0 : i32
    return %c0_i32, %c0_i32_0 : i32, i32
  }
  func.func @transform_4(%arg0: i32) -> (i32, i32) {
    %c0_i32 = arith.constant 0 : i32
    %c0_i32_0 = arith.constant 0 : i32
    %c0_i32_1 = arith.constant 0 : i32
    return %c0_i32, %c0_i32_0 : i32, i32
  }
  func.func @transform_5(%arg0: i32) -> (i32, i32, i32) {
    %c0_i32 = arith.constant 0 : i32
    %c0_i32_0 = arith.constant 0 : i32
    %c0_i32_1 = arith.constant 0 : i32
    return %c0_i32, %arg0, %c0_i32_0 : i32, i32, i32
  }
  func.func @transform_6(%arg0: i32) -> (i32, i32) {
    %c0_i32 = arith.constant 0 : i32
    %c0_i32_0 = arith.constant 0 : i32
    return %arg0, %c0_i32 : i32, i32
  }
}

</mosaic_0001>

<bundles_post_ra>
// kernel: tpu_custom_call.1
= control target key start
LH: loop header
LB: loop body
LE: loop exit
PB: predicated region body
PF: predicated region fallthrough
CT: control target
= control target key end

     0   :  { %vm31_vm0 = vcmask 130048   ;;  %s1696_s0 = inlined_call_operand.vmem [shape: f32[2,16], index: 0, kind: input, shape index: {}]   ;;  %s1697_s1 = inlined_call_operand.vmem [shape: f32[16,128], index: 1, kind: input, shape index: {}]   ;;  %s1698_s2 = inlined_call_operand.vmem [shape: f32[1,128], index: 2, kind: input, shape index: {}]   ;;  %s1699_s3 = inlined_call_operand.vmem [shape: f32[128,8], index: 3, kind: input, shape index: {}]   ;;  %s1700_s4 = inlined_call_operand.vmem [shape: f32[1,8], index: 4, kind: input, shape index: {}]   ;;  %s1701_s5 = inlined_call_operand.vmem [shape: f32[20,2,128], index: 5, kind: input, shape index: {}]   ;;  %s1702_s6 = inlined_call_operand.hbm [shape: f32[2,12], index: 6, kind: output, shape index: {}]  }
   0x1   :  { %v26_v0 = vld [vmem:[%s1697_s1 + $0x8] sm:$0xff]  ;;  %v25_v1 = vld [vmem:[%s1697_s1] sm:$0xff]  ;;  %v1043_v3 = vld [vmem:[%s1699_s3 + $0x78] sm:$0xff] }
   0x2   :  { %49 = vmatpush.msra.mxu0 %v26_v0  ;;  %v24_v2 = vld [vmem:[%s1696_s0] sm:$0x3]  ;;  %v1048_v4 = vld [vmem:[%s1699_s3 + $0x70] sm:$0xff]  ;;  %78 = vmatpush.msra.mxu1 %v1043_v3  ;;  %v1056_v5 = vld [vmem:[%s1699_s3 + $0x68] sm:$0xff] }
   0x3   :  { %113 = vmatpush.msra.mxu2 %v1043_v3  ;;  %148 = vmatpush.msra.mxu3 %v1043_v3  ;;  %v1064_v6 = vld [vmem:[%s1699_s3 + $0x60] sm:$0xff]  ;;  %v1073_v7 = vld [vmem:[%s1699_s3 + $0x58] sm:$0xff] }
   0x4   :  { %50 = vmatpush.msra.mxu0 %v25_v1  ;;  %79 = vmatpush.msra.mxu1 %v1048_v4 }
   0x5   :  { %864 = vmatmul.msk.f32.vlgmr.msra.gmra.mxu0 %vm31_vm0, %v24_v2  ;;  %114 = vmatpush.msra.mxu2 %v1048_v4 }
   0x6   :  { %183 = vmatpush.msrb.mxu0 %v1043_v3  ;;  %149 = vmatpush.msra.mxu3 %v1048_v4 }
   0x7   :  { %80 = vmatpush.msra.mxu1 %v1056_v5  ;;  %115 = vmatpush.msra.mxu2 %v1056_v5 }
   0x8   :  { %184 = vmatpush.msrb.mxu0 %v1048_v4 }
   0x9   :  { %11 = vsyncpa [#allocation3], 0  ;;  %150 = vmatpush.msra.mxu3 %v1056_v5  ;;  %81 = vmatpush.msra.mxu1 %v1064_v6  ;;  %v1082_v8 = vld [vmem:[%s1699_s3 + $0x50] sm:$0xff]  ;;  %v1091_v9 = vld [vmem:[%s1699_s3 + $0x48] sm:$0xff]  ;;  %vm838_vm1 = vcmask 25600   ;;  %vm840_vm2 = vcmask 58400  }
   0xa   :  { %185 = vmatpush.msrb.mxu0 %v1056_v5  ;;  %116 = vmatpush.msra.mxu2 %v1064_v6  ;;  %v1100_v10 = vld [vmem:[%s1699_s3 + $0x40] sm:$0xff]  ;;  %v1109_v11 = vld [vmem:[%s1699_s3 + $0x38] sm:$0xff]  ;;  %v1118_v12 = vld [vmem:[%s1699_s3 + $0x30] sm:$0xff]  ;;  %s995_s20 = smov [#allocation2]   ;;  %s855_s24 = sshll.u32 %s1702_s6, 4  ;;  %vm846_vm3 = vcmask 91200   ;;  %s856_s24 = int_to_ptr.hbm [resolvable:$true] %s855_s24 }
   0xb   :  { %151 = vmatpush.msra.mxu3 %v1064_v6  ;;  %82 = vmatpush.msra.mxu1 %v1073_v7  ;;  %v1127_v13 = vld [vmem:[%s1699_s3 + $0x28] sm:$0xff]  ;;  %v1136_v14 = vld [vmem:[%s1699_s3 + $0x20] sm:$0xff]  ;;  %v1145_v15 = vld [vmem:[%s1699_s3 + $0x18] sm:$0xff]  ;;  %s853_s21 = sshll.u32 %s995_s20, 4  ;;  %s854_s21 = int_to_ptr.vmem [resolvable:$true] %s853_s21 }
   0xc   :  { %186 = vmatpush.msrb.mxu0 %v1064_v6  ;;  %117 = vmatpush.msra.mxu2 %v1073_v7  ;;  %v1154_v16 = vld [vmem:[%s1699_s3 + $0x10] sm:$0xff]  ;;  %v1163_v17 = vld [vmem:[%s1699_s3 + $0x8] sm:$0xff]  ;;  %v1172_v18 = vld [vmem:[%s1699_s3] sm:$0xff] }
   0xd   :  { %152 = vmatpush.msra.mxu3 %v1073_v7  ;;  %83 = vmatpush.msra.mxu1 %v1082_v8  ;;  %v886_v19 = vld [vmem:[%s1698_s2] ss:$0 sm:$0xff]  ;;  %v865_v23 = vld [vmem:[%s1701_s5 + $0x2] sm:$0x3]  ;;  %v866_v24 = vld [vmem:[%s1701_s5 + $0x4] sm:$0x3] }
   0xe   :  { %187 = vmatpush.msrb.mxu0 %v1073_v7  ;;  %118 = vmatpush.msra.mxu2 %v1082_v8  ;;  %v73_v22 = vld [vmem:[%s1701_s5] sm:$0x3]  ;;  %v867_v25 = vld [vmem:[%s1701_s5 + $0x6] sm:$0x3]  ;;  %v868_v31 = vld [vmem:[%s1701_s5 + $0x8] sm:$0x3] }
   0xf   :  { %153 = vmatpush.msra.mxu3 %v1082_v8  ;;  %84 = vmatpush.msra.mxu1 %v1091_v9  ;;  %v869_v32 = vld [vmem:[%s1701_s5 + $0xa] sm:$0x3]  ;;  %v870_v33 = vld [vmem:[%s1701_s5 + $0xc] sm:$0x3]  ;;  %v871_v34 = vld [vmem:[%s1701_s5 + $0xe] sm:$0x3] }
  0x10   :  { %188 = vmatpush.msrb.mxu0 %v1082_v8  ;;  %119 = vmatpush.msra.mxu2 %v1091_v9  ;;  %v872_v39 = vld [vmem:[%s1701_s5 + $0x10] sm:$0x3]  ;;  %v873_v40 = vld [vmem:[%s1701_s5 + $0x12] sm:$0x3]  ;;  %v874_v41 = vld [vmem:[%s1701_s5 + $0x14] sm:$0x3] }
  0x11   :  { %154 = vmatpush.msra.mxu3 %v1091_v9  ;;  %85 = vmatpush.msra.mxu1 %v1100_v10  ;;  %v875_v42 = vld [vmem:[%s1701_s5 + $0x16] sm:$0x3]  ;;  %v876_v47 = vld [vmem:[%s1701_s5 + $0x18] sm:$0x3]  ;;  %v877_v48 = vld [vmem:[%s1701_s5 + $0x1a] sm:$0x3] }
  0x12   :  { %189 = vmatpush.msrb.mxu0 %v1091_v9  ;;  %120 = vmatpush.msra.mxu2 %v1100_v10  ;;  %v878_v49 = vld [vmem:[%s1701_s5 + $0x1c] sm:$0x3]  ;;  %v879_v50 = vld [vmem:[%s1701_s5 + $0x1e] sm:$0x3]  ;;  %v880_v55 = vld [vmem:[%s1701_s5 + $0x20] sm:$0x3] }
  0x13   :  { %155 = vmatpush.msra.mxu3 %v1100_v10  ;;  %86 = vmatpush.msra.mxu1 %v1109_v11  ;;  %v881_v56 = vld [vmem:[%s1701_s5 + $0x22] sm:$0x3]  ;;  %v882_v57 = vld [vmem:[%s1701_s5 + $0x24] sm:$0x3]  ;;  %v883_v58 = vld [vmem:[%s1701_s5 + $0x26] sm:$0x3] }
  0x14   :  { %190 = vmatpush.msrb.mxu0 %v1100_v10  ;;  %121 = vmatpush.msra.mxu2 %v1109_v11  ;;  %v1528_v0 = vld [vmem:[%s1700_s4] ss:$0 sm:$0xff]  ;;  %s994_s4 = smov 8  }
  0x15   :  { %156 = vmatpush.msra.mxu3 %v1109_v11  ;;  %87 = vmatpush.msra.mxu1 %v1118_v12 }
  0x16   :  { %191 = vmatpush.msrb.mxu0 %v1109_v11  ;;  %122 = vmatpush.msra.mxu2 %v1118_v12 }
  0x17   :  { %157 = vmatpush.msra.mxu3 %v1118_v12  ;;  %88 = vmatpush.msra.mxu1 %v1127_v13 }
  0x18   :  { %192 = vmatpush.msrb.mxu0 %v1118_v12  ;;  %123 = vmatpush.msra.mxu2 %v1127_v13 }
  0x19   :  { %158 = vmatpush.msra.mxu3 %v1127_v13  ;;  %89 = vmatpush.msra.mxu1 %v1136_v14 }
  0x1a   :  { %193 = vmatpush.msrb.mxu0 %v1127_v13  ;;  %124 = vmatpush.msra.mxu2 %v1136_v14 }
  0x1b   :  { %159 = vmatpush.msra.mxu3 %v1136_v14  ;;  %90 = vmatpush.msra.mxu1 %v1145_v15 }
  0x1c   :  { %194 = vmatpush.msrb.mxu0 %v1136_v14  ;;  %125 = vmatpush.msra.mxu2 %v1145_v15 }
  0x1d   :  { %160 = vmatpush.msra.mxu3 %v1145_v15  ;;  %91 = vmatpush.msra.mxu1 %v1154_v16 }
  0x1e   :  { %195 = vmatpush.msrb.mxu0 %v1145_v15  ;;  %126 = vmatpush.msra.mxu2 %v1154_v16 }
  0x1f   :  { %161 = vmatpush.msra.mxu3 %v1154_v16  ;;  %92 = vmatpush.msra.mxu1 %v1163_v17 }
  0x20   :  { %196 = vmatpush.msrb.mxu0 %v1154_v16  ;;  %127 = vmatpush.msra.mxu2 %v1163_v17 }
  0x21   :  { %162 = vmatpush.msra.mxu3 %v1163_v17  ;;  %93 = vmatpush.msra.mxu1 %v1172_v18 }
  0x22   :  { %197 = vmatpush.msrb.mxu0 %v1163_v17  ;;  %128 = vmatpush.msra.mxu2 %v1172_v18 }
  0x23   :  { %163 = vmatpush.msra.mxu3 %v1172_v18  ;;  %218 = vmatpush.msrb.mxu1 %v1043_v3 }
  0x24   :  { %198 = vmatpush.msrb.mxu0 %v1172_v18  ;;  %253 = vmatpush.msrb.mxu2 %v1043_v3 }
  0x25   :  { %288 = vmatpush.msrb.mxu3 %v1043_v3  ;;  %219 = vmatpush.msrb.mxu1 %v1048_v4 }
  0x26   :  { %323 = vmatpush.msra.mxu0 %v1043_v3  ;;  %254 = vmatpush.msrb.mxu2 %v1048_v4 }
  0x27   :  { %289 = vmatpush.msrb.mxu3 %v1048_v4  ;;  %220 = vmatpush.msrb.mxu1 %v1056_v5 }
  0x28   :  { %324 = vmatpush.msra.mxu0 %v1048_v4  ;;  %255 = vmatpush.msrb.mxu2 %v1056_v5 }
  0x29   :  { %290 = vmatpush.msrb.mxu3 %v1056_v5  ;;  %221 = vmatpush.msrb.mxu1 %v1064_v6 }
  0x2a   :  { %325 = vmatpush.msra.mxu0 %v1056_v5  ;;  %256 = vmatpush.msrb.mxu2 %v1064_v6 }
  0x2b   :  { %291 = vmatpush.msrb.mxu3 %v1064_v6  ;;  %222 = vmatpush.msrb.mxu1 %v1073_v7 }
  0x2c   :  { %326 = vmatpush.msra.mxu0 %v1064_v6  ;;  %257 = vmatpush.msrb.mxu2 %v1073_v7 }
  0x2d   :  { %292 = vmatpush.msrb.mxu3 %v1073_v7  ;;  %223 = vmatpush.msrb.mxu1 %v1082_v8 }
  0x2e   :  { %327 = vmatpush.msra.mxu0 %v1073_v7  ;;  %258 = vmatpush.msrb.mxu2 %v1082_v8 }
  0x2f   :  { %293 = vmatpush.msrb.mxu3 %v1082_v8  ;;  %224 = vmatpush.msrb.mxu1 %v1091_v9 }
  0x30   :  { %328 = vmatpush.msra.mxu0 %v1082_v8  ;;  %259 = vmatpush.msrb.mxu2 %v1091_v9 }
  0x31   :  { %294 = vmatpush.msrb.mxu3 %v1091_v9  ;;  %225 = vmatpush.msrb.mxu1 %v1100_v10 }
  0x32   :  { %329 = vmatpush.msra.mxu0 %v1091_v9  ;;  %260 = vmatpush.msrb.mxu2 %v1100_v10 }
  0x33   :  { %295 = vmatpush.msrb.mxu3 %v1100_v10  ;;  %226 = vmatpush.msrb.mxu1 %v1109_v11 }
  0x34   :  { %330 = vmatpush.msra.mxu0 %v1100_v10  ;;  %261 = vmatpush.msrb.mxu2 %v1109_v11 }
  0x35   :  { %296 = vmatpush.msrb.mxu3 %v1109_v11  ;;  %227 = vmatpush.msrb.mxu1 %v1118_v12 }
  0x36   :  { %331 = vmatpush.msra.mxu0 %v1109_v11  ;;  %262 = vmatpush.msrb.mxu2 %v1118_v12 }
  0x37   :  { %297 = vmatpush.msrb.mxu3 %v1118_v12  ;;  %228 = vmatpush.msrb.mxu1 %v1127_v13 }
  0x38   :  { %332 = vmatpush.msra.mxu0 %v1118_v12  ;;  %263 = vmatpush.msrb.mxu2 %v1127_v13 }
  0x39   :  { %298 = vmatpush.msrb.mxu3 %v1127_v13  ;;  %229 = vmatpush.msrb.mxu1 %v1136_v14 }
  0x3a   :  { %333 = vmatpush.msra.mxu0 %v1127_v13  ;;  %264 = vmatpush.msrb.mxu2 %v1136_v14 }
  0x3b   :  { %299 = vmatpush.msrb.mxu3 %v1136_v14  ;;  %230 = vmatpush.msrb.mxu1 %v1145_v15 }
  0x3c   :  { %334 = vmatpush.msra.mxu0 %v1136_v14  ;;  %265 = vmatpush.msrb.mxu2 %v1145_v15 }
  0x3d   :  { %300 = vmatpush.msrb.mxu3 %v1145_v15  ;;  %231 = vmatpush.msrb.mxu1 %v1154_v16 }
  0x3e   :  { %335 = vmatpush.msra.mxu0 %v1145_v15  ;;  %266 = vmatpush.msrb.mxu2 %v1154_v16 }
  0x3f   :  { %301 = vmatpush.msrb.mxu3 %v1154_v16  ;;  %232 = vmatpush.msrb.mxu1 %v1163_v17 }
  0x40   :  { %336 = vmatpush.msra.mxu0 %v1154_v16  ;;  %267 = vmatpush.msrb.mxu2 %v1163_v17 }
  0x41   :  { %302 = vmatpush.msrb.mxu3 %v1163_v17  ;;  %233 = vmatpush.msrb.mxu1 %v1172_v18 }
  0x42   :  { %337 = vmatpush.msra.mxu0 %v1163_v17  ;;  %268 = vmatpush.msrb.mxu2 %v1172_v18 }
  0x43   :  { %303 = vmatpush.msrb.mxu3 %v1172_v18 }
  0x44   :  { %338 = vmatpush.msra.mxu0 %v1172_v18 }
  0x82   :  { %v52_v20 = vpop.f32.mrf.mxu0 }
  0x83   :  { %v53_v21 = vadd.f32 %v886_v19, %v52_v20 }
  0x85   :  { %v1263_v26 = vmax.f32 %v53_v21, 0.0 }
  0x87   :  { %v74_v27 = vmul.f32 %v73_v22, %v1263_v26  ;;  %v112_v28 = vmul.f32 %v865_v23, %v1263_v26  ;;  %v147_v29 = vmul.f32 %v866_v24, %v1263_v26  ;;  %v182_v30 = vmul.f32 %v867_v25, %v1263_v26 }
  0x88   :  { %v217_v35 = vmul.f32 %v868_v31, %v1263_v26  ;;  %v252_v36 = vmul.f32 %v869_v32, %v1263_v26  ;;  %v287_v37 = vmul.f32 %v870_v33, %v1263_v26  ;;  %v322_v38 = vmul.f32 %v871_v34, %v1263_v26 }
  0x89   :  { %94 = vmatmul.f32.vlgmr.msra.gmra.mxu1 %v74_v27  ;;  %129 = vmatmul.f32.vlgmr.msra.gmra.mxu2 %v112_v28  ;;  %v357_v43 = vmul.f32 %v872_v39, %v1263_v26  ;;  %v392_v44 = vmul.f32 %v873_v40, %v1263_v26  ;;  %v427_v45 = vmul.f32 %v874_v41, %v1263_v26 }
  0x8a   :  { %164 = vmatmul.f32.vlgmr.msra.gmra.mxu3 %v147_v29  ;;  %199 = vmatmul.f32.vlgmr.msrb.gmra.mxu0 %v182_v30  ;;  %v462_v46 = vmul.f32 %v875_v42, %v1263_v26  ;;  %v497_v51 = vmul.f32 %v876_v47, %v1263_v26  ;;  %v532_v52 = vmul.f32 %v877_v48, %v1263_v26 }
  0x8b   :  { %358 = vmatpush.msra.mxu1 %v1043_v3  ;;  %393 = vmatpush.msra.mxu2 %v1043_v3  ;;  %v567_v53 = vmul.f32 %v878_v49, %v1263_v26  ;;  %v602_v54 = vmul.f32 %v879_v50, %v1263_v26  ;;  %v637_v59 = vmul.f32 %v880_v55, %v1263_v26 }
  0x8c   :  { %428 = vmatpush.msra.mxu3 %v1043_v3  ;;  %463 = vmatpush.msrb.mxu0 %v1043_v3  ;;  %v672_v60 = vmul.f32 %v881_v56, %v1263_v26  ;;  %v707_v61 = vmul.f32 %v882_v57, %v1263_v26  ;;  %v742_v62 = vmul.f32 %v883_v58, %v1263_v26 }
  0x8d   :  { %359 = vmatpush.msra.mxu1 %v1048_v4  ;;  %394 = vmatpush.msra.mxu2 %v1048_v4 }
  0x8e   :  { %429 = vmatpush.msra.mxu3 %v1048_v4  ;;  %464 = vmatpush.msrb.mxu0 %v1048_v4 }
  0x8f   :  { %360 = vmatpush.msra.mxu1 %v1056_v5  ;;  %395 = vmatpush.msra.mxu2 %v1056_v5 }
  0x90   :  { %430 = vmatpush.msra.mxu3 %v1056_v5  ;;  %465 = vmatpush.msrb.mxu0 %v1056_v5 }
  0x91   :  { %361 = vmatpush.msra.mxu1 %v1064_v6  ;;  %396 = vmatpush.msra.mxu2 %v1064_v6 }
  0x92   :  { %431 = vmatpush.msra.mxu3 %v1064_v6  ;;  %466 = vmatpush.msrb.mxu0 %v1064_v6 }
  0x93   :  { %234 = vmatmul.f32.vlgmr.msrb.gmra.mxu1 %v217_v35  ;;  %269 = vmatmul.f32.vlgmr.msrb.gmra.mxu2 %v252_v36 }
  0x94   :  { %304 = vmatmul.f32.vlgmr.msrb.gmra.mxu3 %v287_v37  ;;  %339 = vmatmul.f32.vlgmr.msra.gmra.mxu0 %v322_v38 }
  0x95   :  { %362 = vmatpush.msra.mxu1 %v1073_v7  ;;  %397 = vmatpush.msra.mxu2 %v1073_v7 }
  0x96   :  { %432 = vmatpush.msra.mxu3 %v1073_v7  ;;  %467 = vmatpush.msrb.mxu0 %v1073_v7 }
  0x97   :  { %363 = vmatpush.msra.mxu1 %v1082_v8  ;;  %398 = vmatpush.msra.mxu2 %v1082_v8 }
  0x98   :  { %433 = vmatpush.msra.mxu3 %v1082_v8  ;;  %468 = vmatpush.msrb.mxu0 %v1082_v8 }
  0x99   :  { %364 = vmatpush.msra.mxu1 %v1091_v9  ;;  %399 = vmatpush.msra.mxu2 %v1091_v9 }
  0x9a   :  { %434 = vmatpush.msra.mxu3 %v1091_v9  ;;  %469 = vmatpush.msrb.mxu0 %v1091_v9 }
  0x9b   :  { %365 = vmatpush.msra.mxu1 %v1100_v10  ;;  %400 = vmatpush.msra.mxu2 %v1100_v10 }
  0x9c   :  { %435 = vmatpush.msra.mxu3 %v1100_v10  ;;  %470 = vmatpush.msrb.mxu0 %v1100_v10 }
  0x9d   :  { %366 = vmatpush.msra.mxu1 %v1109_v11  ;;  %401 = vmatpush.msra.mxu2 %v1109_v11 }
  0x9e   :  { %436 = vmatpush.msra.mxu3 %v1109_v11  ;;  %471 = vmatpush.msrb.mxu0 %v1109_v11 }
  0x9f   :  { %367 = vmatpush.msra.mxu1 %v1118_v12  ;;  %402 = vmatpush.msra.mxu2 %v1118_v12 }
  0xa0   :  { %437 = vmatpush.msra.mxu3 %v1118_v12  ;;  %472 = vmatpush.msrb.mxu0 %v1118_v12 }
  0xa1   :  { %368 = vmatpush.msra.mxu1 %v1127_v13  ;;  %403 = vmatpush.msra.mxu2 %v1127_v13 }
  0xa2   :  { %438 = vmatpush.msra.mxu3 %v1127_v13  ;;  %473 = vmatpush.msrb.mxu0 %v1127_v13 }
  0xa3   :  { %369 = vmatpush.msra.mxu1 %v1136_v14  ;;  %404 = vmatpush.msra.mxu2 %v1136_v14 }
  0xa4   :  { %439 = vmatpush.msra.mxu3 %v1136_v14  ;;  %474 = vmatpush.msrb.mxu0 %v1136_v14 }
  0xa5   :  { %370 = vmatpush.msra.mxu1 %v1145_v15  ;;  %405 = vmatpush.msra.mxu2 %v1145_v15 }
  0xa6   :  { %440 = vmatpush.msra.mxu3 %v1145_v15  ;;  %475 = vmatpush.msrb.mxu0 %v1145_v15 }
  0xa7   :  { %371 = vmatpush.msra.mxu1 %v1154_v16  ;;  %406 = vmatpush.msra.mxu2 %v1154_v16 }
  0xa8   :  { %441 = vmatpush.msra.mxu3 %v1154_v16  ;;  %476 = vmatpush.msrb.mxu0 %v1154_v16 }
  0xa9   :  { %372 = vmatpush.msra.mxu1 %v1163_v17  ;;  %407 = vmatpush.msra.mxu2 %v1163_v17 }
  0xaa   :  { %442 = vmatpush.msra.mxu3 %v1163_v17  ;;  %477 = vmatpush.msrb.mxu0 %v1163_v17 }
  0xab   :  { %373 = vmatpush.msra.mxu1 %v1172_v18  ;;  %408 = vmatpush.msra.mxu2 %v1172_v18 }
  0xac   :  { %443 = vmatpush.msra.mxu3 %v1172_v18  ;;  %478 = vmatpush.msrb.mxu0 %v1172_v18 }
  0xad   :  { %374 = vmatmul.f32.vlgmr.msra.gmra.mxu1 %v357_v43  ;;  %409 = vmatmul.f32.vlgmr.msra.gmra.mxu2 %v392_v44 }
  0xae   :  { %444 = vmatmul.f32.vlgmr.msra.gmra.mxu3 %v427_v45  ;;  %479 = vmatmul.f32.vlgmr.msrb.gmra.mxu0 %v462_v46 }
  0xaf   :  { %498 = vmatpush.msrb.mxu1 %v1043_v3  ;;  %533 = vmatpush.msrb.mxu2 %v1043_v3 }
  0xb0   :  { %568 = vmatpush.msrb.mxu3 %v1043_v3  ;;  %603 = vmatpush.msra.mxu0 %v1043_v3 }
  0xb1   :  { %499 = vmatpush.msrb.mxu1 %v1048_v4  ;;  %534 = vmatpush.msrb.mxu2 %v1048_v4 }
  0xb2   :  { %569 = vmatpush.msrb.mxu3 %v1048_v4  ;;  %604 = vmatpush.msra.mxu0 %v1048_v4 }
  0xb3   :  { %500 = vmatpush.msrb.mxu1 %v1056_v5  ;;  %535 = vmatpush.msrb.mxu2 %v1056_v5 }
  0xb4   :  { %570 = vmatpush.msrb.mxu3 %v1056_v5  ;;  %605 = vmatpush.msra.mxu0 %v1056_v5 }
  0xb5   :  { %501 = vmatpush.msrb.mxu1 %v1064_v6  ;;  %536 = vmatpush.msrb.mxu2 %v1064_v6 }
  0xb6   :  { %571 = vmatpush.msrb.mxu3 %v1064_v6  ;;  %606 = vmatpush.msra.mxu0 %v1064_v6 }
  0xb7   :  { %502 = vmatpush.msrb.mxu1 %v1073_v7  ;;  %537 = vmatpush.msrb.mxu2 %v1073_v7 }
  0xb8   :  { %572 = vmatpush.msrb.mxu3 %v1073_v7  ;;  %607 = vmatpush.msra.mxu0 %v1073_v7 }
  0xb9   :  { %503 = vmatpush.msrb.mxu1 %v1082_v8  ;;  %538 = vmatpush.msrb.mxu2 %v1082_v8 }
  0xba   :  { %573 = vmatpush.msrb.mxu3 %v1082_v8  ;;  %608 = vmatpush.msra.mxu0 %v1082_v8 }
  0xbb   :  { %504 = vmatpush.msrb.mxu1 %v1091_v9  ;;  %539 = vmatpush.msrb.mxu2 %v1091_v9 }
  0xbc   :  { %574 = vmatpush.msrb.mxu3 %v1091_v9  ;;  %609 = vmatpush.msra.mxu0 %v1091_v9 }
  0xbd   :  { %505 = vmatpush.msrb.mxu1 %v1100_v10  ;;  %540 = vmatpush.msrb.mxu2 %v1100_v10 }
  0xbe   :  { %575 = vmatpush.msrb.mxu3 %v1100_v10  ;;  %610 = vmatpush.msra.mxu0 %v1100_v10 }
  0xbf   :  { %506 = vmatpush.msrb.mxu1 %v1109_v11  ;;  %541 = vmatpush.msrb.mxu2 %v1109_v11 }
  0xc0   :  { %576 = vmatpush.msrb.mxu3 %v1109_v11  ;;  %611 = vmatpush.msra.mxu0 %v1109_v11 }
  0xc1   :  { %507 = vmatpush.msrb.mxu1 %v1118_v12  ;;  %542 = vmatpush.msrb.mxu2 %v1118_v12 }
  0xc2   :  { %577 = vmatpush.msrb.mxu3 %v1118_v12  ;;  %612 = vmatpush.msra.mxu0 %v1118_v12 }
  0xc3   :  { %508 = vmatpush.msrb.mxu1 %v1127_v13  ;;  %543 = vmatpush.msrb.mxu2 %v1127_v13 }
  0xc4   :  { %578 = vmatpush.msrb.mxu3 %v1127_v13  ;;  %613 = vmatpush.msra.mxu0 %v1127_v13 }
  0xc5   :  { %509 = vmatpush.msrb.mxu1 %v1136_v14  ;;  %544 = vmatpush.msrb.mxu2 %v1136_v14 }
  0xc6   :  { %579 = vmatpush.msrb.mxu3 %v1136_v14  ;;  %614 = vmatpush.msra.mxu0 %v1136_v14 }
  0xc7   :  { %510 = vmatpush.msrb.mxu1 %v1145_v15  ;;  %545 = vmatpush.msrb.mxu2 %v1145_v15 }
  0xc8   :  { %580 = vmatpush.msrb.mxu3 %v1145_v15  ;;  %615 = vmatpush.msra.mxu0 %v1145_v15 }
  0xc9   :  { %511 = vmatpush.msrb.mxu1 %v1154_v16  ;;  %546 = vmatpush.msrb.mxu2 %v1154_v16 }
  0xca   :  { %581 = vmatpush.msrb.mxu3 %v1154_v16  ;;  %616 = vmatpush.msra.mxu0 %v1154_v16 }
  0xcb   :  { %512 = vmatpush.msrb.mxu1 %v1163_v17  ;;  %547 = vmatpush.msrb.mxu2 %v1163_v17 }
  0xcc   :  { %582 = vmatpush.msrb.mxu3 %v1163_v17  ;;  %617 = vmatpush.msra.mxu0 %v1163_v17 }
  0xcd   :  { %513 = vmatpush.msrb.mxu1 %v1172_v18  ;;  %548 = vmatpush.msrb.mxu2 %v1172_v18 }
  0xce   :  { %583 = vmatpush.msrb.mxu3 %v1172_v18  ;;  %618 = vmatpush.msra.mxu0 %v1172_v18 }
  0xcf   :  { %514 = vmatmul.f32.vlgmr.msrb.gmra.mxu1 %v497_v51  ;;  %549 = vmatmul.f32.vlgmr.msrb.gmra.mxu2 %v532_v52 }
  0xd0   :  { %584 = vmatmul.f32.vlgmr.msrb.gmra.mxu3 %v567_v53  ;;  %619 = vmatmul.f32.vlgmr.msra.gmra.mxu0 %v602_v54 }
  0xd1   :  { %638 = vmatpush.msra.mxu1 %v1043_v3  ;;  %673 = vmatpush.msra.mxu2 %v1043_v3 }
  0xd2   :  { %708 = vmatpush.msra.mxu3 %v1043_v3  ;;  %743 = vmatpush.msrb.mxu0 %v1043_v3 }
  0xd3   :  { %639 = vmatpush.msra.mxu1 %v1048_v4  ;;  %674 = vmatpush.msra.mxu2 %v1048_v4 }
  0xd4   :  { %709 = vmatpush.msra.mxu3 %v1048_v4  ;;  %744 = vmatpush.msrb.mxu0 %v1048_v4 }
  0xd5   :  { %640 = vmatpush.msra.mxu1 %v1056_v5  ;;  %675 = vmatpush.msra.mxu2 %v1056_v5 }
  0xd6   :  { %710 = vmatpush.msra.mxu3 %v1056_v5  ;;  %745 = vmatpush.msrb.mxu0 %v1056_v5 }
  0xd7   :  { %641 = vmatpush.msra.mxu1 %v1064_v6  ;;  %676 = vmatpush.msra.mxu2 %v1064_v6 }
  0xd8   :  { %711 = vmatpush.msra.mxu3 %v1064_v6  ;;  %746 = vmatpush.msrb.mxu0 %v1064_v6 }
  0xd9   :  { %642 = vmatpush.msra.mxu1 %v1073_v7  ;;  %677 = vmatpush.msra.mxu2 %v1073_v7 }
  0xda   :  { %712 = vmatpush.msra.mxu3 %v1073_v7  ;;  %747 = vmatpush.msrb.mxu0 %v1073_v7 }
  0xdb   :  { %643 = vmatpush.msra.mxu1 %v1082_v8  ;;  %678 = vmatpush.msra.mxu2 %v1082_v8 }
  0xdc   :  { %713 = vmatpush.msra.mxu3 %v1082_v8  ;;  %748 = vmatpush.msrb.mxu0 %v1082_v8 }
  0xdd   :  { %644 = vmatpush.msra.mxu1 %v1091_v9  ;;  %679 = vmatpush.msra.mxu2 %v1091_v9 }
  0xde   :  { %714 = vmatpush.msra.mxu3 %v1091_v9  ;;  %749 = vmatpush.msrb.mxu0 %v1091_v9 }
  0xdf   :  { %645 = vmatpush.msra.mxu1 %v1100_v10  ;;  %680 = vmatpush.msra.mxu2 %v1100_v10 }
  0xe0   :  { %715 = vmatpush.msra.mxu3 %v1100_v10  ;;  %750 = vmatpush.msrb.mxu0 %v1100_v10 }
  0xe1   :  { %646 = vmatpush.msra.mxu1 %v1109_v11  ;;  %681 = vmatpush.msra.mxu2 %v1109_v11 }
  0xe2   :  { %716 = vmatpush.msra.mxu3 %v1109_v11  ;;  %751 = vmatpush.msrb.mxu0 %v1109_v11 }
  0xe3   :  { %647 = vmatpush.msra.mxu1 %v1118_v12  ;;  %682 = vmatpush.msra.mxu2 %v1118_v12 }
  0xe4   :  { %717 = vmatpush.msra.mxu3 %v1118_v12  ;;  %752 = vmatpush.msrb.mxu0 %v1118_v12 }
  0xe5   :  { %648 = vmatpush.msra.mxu1 %v1127_v13  ;;  %683 = vmatpush.msra.mxu2 %v1127_v13 }
  0xe6   :  { %718 = vmatpush.msra.mxu3 %v1127_v13  ;;  %753 = vmatpush.msrb.mxu0 %v1127_v13 }
  0xe7   :  { %649 = vmatpush.msra.mxu1 %v1136_v14  ;;  %684 = vmatpush.msra.mxu2 %v1136_v14 }
  0xe8   :  { %719 = vmatpush.msra.mxu3 %v1136_v14  ;;  %754 = vmatpush.msrb.mxu0 %v1136_v14 }
  0xe9   :  { %650 = vmatpush.msra.mxu1 %v1145_v15  ;;  %685 = vmatpush.msra.mxu2 %v1145_v15 }
  0xea   :  { %720 = vmatpush.msra.mxu3 %v1145_v15  ;;  %755 = vmatpush.msrb.mxu0 %v1145_v15 }
  0xeb   :  { %651 = vmatpush.msra.mxu1 %v1154_v16  ;;  %686 = vmatpush.msra.mxu2 %v1154_v16 }
  0xec   :  { %721 = vmatpush.msra.mxu3 %v1154_v16  ;;  %756 = vmatpush.msrb.mxu0 %v1154_v16 }
  0xed   :  { %652 = vmatpush.msra.mxu1 %v1163_v17  ;;  %687 = vmatpush.msra.mxu2 %v1163_v17 }
  0xee   :  { %722 = vmatpush.msra.mxu3 %v1163_v17  ;;  %757 = vmatpush.msrb.mxu0 %v1163_v17 }
  0xef   :  { %653 = vmatpush.msra.mxu1 %v1172_v18  ;;  %688 = vmatpush.msra.mxu2 %v1172_v18 }
  0xf0   :  { %723 = vmatpush.msra.mxu3 %v1172_v18  ;;  %758 = vmatpush.msrb.mxu0 %v1172_v18 }
  0xf1   :  { %654 = vmatmul.f32.vlgmr.msra.gmra.mxu1 %v637_v59  ;;  %689 = vmatmul.f32.vlgmr.msra.gmra.mxu2 %v672_v60 }
  0xf2   :  { %724 = vmatmul.f32.vlgmr.msra.gmra.mxu3 %v707_v61  ;;  %759 = vmatmul.f32.vlgmr.msrb.gmra.mxu0 %v742_v62 }
 0x106   :  { %v95_v1 = vpop.f32.mrf.mxu1 }
 0x107   :  { %v1534_v3 = vadd.f32 %v1528_v0, %v95_v1  ;;  %v200_v6 = vpop.f32.mrf.mxu0 }
 0x108   :  { %v1542_v10 = vadd.f32 %v1528_v0, %v200_v6 }
 0x109   :  { %v99_v7 = vand.u32 2147483647, %v1534_v3 }
 0x10a   :  { %v204_v15 = vand.u32 2147483647, %v1542_v10 }
 0x10b   :  { %v100_v11 = vsub.f32 0.0, %v99_v7 }
 0x10c   :  { %v130_v63 = vpop.f32.mrf.mxu2  ;;  %v205_v20 = vsub.f32 0.0, %v204_v15 }
 0x10d   :  { %v1531_v2 = vadd.f32 %v1528_v0, %v130_v63  ;;  %v165_v5 = vpop.f32.mrf.mxu3  ;;  %v101_v17 = vmul.f32 1.442695, %v100_v11 }
 0x10e   :  { %v1539_v8 = vadd.f32 %v1528_v0, %v165_v5  ;;  %v206_v25 = vmul.f32 1.442695, %v205_v20 }
 0x10f   :  { %v134_v4 = vand.u32 2147483647, %v1531_v2  ;;  %v143_v40 = vadd.f32 %v1531_v2, %v1534_v3 }
 0x110   :  { %v169_v12 = vand.u32 2147483647, %v1539_v8  ;;  %v235_v14 = vpop.f32.mrf.mxu1 }
 0x111   :  { %v135_v9 = vsub.f32 0.0, %v134_v4  ;;  %v1547_v19 = vadd.f32 %v1528_v0, %v235_v14  ;;  %v340_v26 = vpop.f32.mrf.mxu0  ;;  %v178_v50 = vadd.f32 %v1539_v8, %v143_v40 }
 0x112   :  { %v170_v18 = vsub.f32 0.0, %v169_v12  ;;  %v1558_v31 = vadd.f32 %v1528_v0, %v340_v26 }
 0x113   :  { %v136_v13 = vmul.f32 1.442695, %v135_v9  ;;  %v239_v23 = vand.u32 2147483647, %v1547_v19  ;;  %v213_v58 = vadd.f32 %v1542_v10, %v178_v50  ;;  %v133_v9 = vmax.f32 %v1531_v2, 0.0 }
 0x114   :  { %v171_v22 = vmul.f32 1.442695, %v170_v18  ;;  %v344_v41 = vand.u32 2147483647, %v1558_v31 }
 0x115   :  { %888 = vpow2.f32 %v136_v13  ;;  %v240_v29 = vsub.f32 0.0, %v239_v23  ;;  %v248_v12 = vadd.f32 %v1547_v19, %v213_v58 }
 0x116   :  { %v270_v16 = vpop.f32.mrf.mxu2  ;;  %890 = vpow2.f32 %v101_v17  ;;  %v345_v51 = vsub.f32 0.0, %v344_v41 }
 0x117   :  { %v1550_v21 = vadd.f32 %v1528_v0, %v270_v16  ;;  %v305_v24 = vpop.f32.mrf.mxu3  ;;  %892 = vpow2.f32 %v171_v22  ;;  %v241_v36 = vmul.f32 1.442695, %v240_v29  ;;  %v98_v16 = vmax.f32 %v1534_v3, 0.0 }
 0x118   :  { %v1555_v30 = vadd.f32 %v1528_v0, %v305_v24  ;;  %894 = vpow2.f32 %v206_v25  ;;  %v346_v59 = vmul.f32 1.442695, %v345_v51 }
 0x119   :  { %v274_v27 = vand.u32 2147483647, %v1550_v21 }
 0x11a   :  { %v309_v37 = vand.u32 2147483647, %v1555_v30 }
 0x11b   :  { %v889_v28 = vpop.eup %888  ;;  %v275_v35 = vsub.f32 0.0, %v274_v27  ;;  %v283_v27 = vadd.f32 %v1550_v21, %v248_v12 }
 0x11c   :  { %v891_v33 = vpop.eup %890  ;;  %v138_v34 = vadd.f32 1.0, %v889_v28  ;;  %v310_v46 = vsub.f32 0.0, %v309_v37 }
 0x11d   :  { %v103_v39 = vadd.f32 1.0, %v891_v33  ;;  %v893_v43 = vpop.eup %892  ;;  %v276_v44 = vmul.f32 1.442695, %v275_v35  ;;  %v168_v35 = vmax.f32 %v1539_v8, 0.0 }
 0x11e   :  { %896 = vlog2.f32 %v138_v34  ;;  %v895_v45 = vpop.eup %894  ;;  %v173_v49 = vadd.f32 1.0, %v893_v43  ;;  %v311_v54 = vmul.f32 1.442695, %v310_v46 }
 0x11f   :  { %898 = vpow2.f32 %v241_v36  ;;  %v208_v52 = vadd.f32 1.0, %v895_v45 }
 0x120   :  { %900 = vlog2.f32 %v103_v39 }
 0x121   :  { %902 = vpow2.f32 %v276_v44  ;;  %v318_v44 = vadd.f32 %v1555_v30, %v283_v27 }
 0x122   :  { %904 = vlog2.f32 %v173_v49 }
 0x123   :  { %906 = vlog2.f32 %v208_v52  ;;  %v203_v52 = vmax.f32 %v1542_v10, 0.0 }
 0x124   :  { %v897_v53 = vpop.eup %896  ;;  %908 = vpow2.f32 %v311_v54 }
 0x125   :  { %v899_v61 = vpop.eup %898  ;;  %v140_v63 = vmul.f32 0.6931472, %v897_v53  ;;  %910 = vpow2.f32 %v346_v59 }
 0x126   :  { %v901_v62 = vpop.eup %900  ;;  %v243_v11 = vadd.f32 1.0, %v899_v61 }
 0x127   :  { %v903_v4 = vpop.eup %902  ;;  %v105_v14 = vmul.f32 0.6931472, %v901_v62  ;;  %v141_v17 = vadd.f32 %v140_v63, %v133_v9  ;;  %v353_v62 = vadd.f32 %v1558_v31, %v318_v44 }
 0x128   :  { %v905_v15 = vpop.eup %904  ;;  %v278_v18 = vadd.f32 1.0, %v903_v4 }
 0x129   :  { %v907_v26 = vpop.eup %906  ;;  %v106_v29 = vadd.f32 %v105_v14, %v98_v16  ;;  %v142_v37 = vadd.f32 1e-10, %v141_v17 }
 0x12a   :  { %v375_v32 = vpop.f32.mrf.mxu1  ;;  %v909_v28 = vpop.eup %908 }
 0x12b   :  { %v1562_v38 = vadd.f32 %v1528_v0, %v375_v32  ;;  %v480_v60 = vpop.f32.mrf.mxu0  ;;  %v175_v32 = vmul.f32 0.6931472, %v905_v15  ;;  %v911_v34 = vpop.eup %910  ;;  %v313_v43 = vadd.f32 1.0, %v909_v28  ;;  %v107_v46 = vadd.f32 1e-10, %v106_v29 }
 0x12c   :  { %v1578_v6 = vadd.f32 %v1528_v0, %v480_v60  ;;  %v348_v49 = vadd.f32 1.0, %v911_v34 }
 0x12d   :  { %v379_v47 = vand.u32 2147483647, %v1562_v38 }
 0x12e   :  { %v484_v22 = vand.u32 2147483647, %v1578_v6 }
 0x12f   :  { %v380_v55 = vsub.f32 0.0, %v379_v47  ;;  %v176_v47 = vadd.f32 %v175_v32, %v168_v35 }
 0x130   :  { %v410_v42 = vpop.f32.mrf.mxu2  ;;  %v485_v39 = vsub.f32 0.0, %v484_v22 }
 0x131   :  { %v1569_v48 = vadd.f32 %v1528_v0, %v410_v42  ;;  %v445_v57 = vpop.f32.mrf.mxu3  ;;  %v381_v5 = vmul.f32 1.442695, %v380_v55  ;;  %v210_v42 = vmul.f32 0.6931472, %v907_v26  ;;  %v144_v55 = vadd.f32 %v142_v37, %v107_v46 }
 0x132   :  { %v1575_v1 = vadd.f32 %v1528_v0, %v445_v57  ;;  %v486_v57 = vmul.f32 1.442695, %v485_v39  ;;  %v308_v46 = vmax.f32 %v1555_v30, 0.0 }
 0x133   :  { %v414_v56 = vand.u32 2147483647, %v1569_v48  ;;  %912 = vpow2.f32 %v381_v5  ;;  %v211_v61 = vadd.f32 %v210_v42, %v203_v52  ;;  %v177_v5 = vadd.f32 1e-10, %v176_v47 }
 0x134   :  { %v449_v20 = vand.u32 2147483647, %v1575_v1  ;;  %914 = vlog2.f32 %v243_v11  ;;  %v388_v11 = vadd.f32 %v1562_v38, %v353_v62  ;;  %v378_v62 = vmax.f32 %v1562_v38, 0.0 }
 0x135   :  { %v415_v7 = vsub.f32 0.0, %v414_v56  ;;  %916 = vlog2.f32 %v278_v18  ;;  %v238_v56 = vmax.f32 %v1547_v19, 0.0  ;;  %v179_v14 = vadd.f32 %v177_v5, %v144_v55 }
 0x136   :  { %v450_v36 = vsub.f32 0.0, %v449_v20  ;;  %v423_v18 = vadd.f32 %v1569_v48, %v388_v11  ;;  %v212_v20 = vadd.f32 1e-10, %v211_v61 }
 0x137   :  { %v416_v23 = vmul.f32 1.442695, %v415_v7 }
 0x138   :  { %v451_v53 = vmul.f32 1.442695, %v450_v36  ;;  %v214_v32 = vadd.f32 %v212_v20, %v179_v14  ;;  %v458_v36 = vadd.f32 %v1575_v1, %v423_v18 }
 0x139   :  { %918 = vpow2.f32 %v416_v23  ;;  %v913_v45 = vpop.eup %912  ;;  %v273_v23 = vmax.f32 %v1550_v21, 0.0 }
 0x13a   :  { %v915_v51 = vpop.eup %914  ;;  %920 = vlog2.f32 %v313_v43  ;;  %v383_v63 = vadd.f32 1.0, %v913_v45 }
 0x13b   :  { %v917_v60 = vpop.eup %916  ;;  %v245_v7 = vmul.f32 0.6931472, %v915_v51  ;;  %922 = vlog2.f32 %v348_v49 }
 0x13c   :  { %924 = vpow2.f32 %v451_v53  ;;  %v280_v15 = vmul.f32 0.6931472, %v917_v60  ;;  %v343_v60 = vmax.f32 %v1558_v31, 0.0 }
 0x13d   :  { %926 = vpow2.f32 %v486_v57  ;;  %v246_v22 = vadd.f32 %v245_v7, %v238_v56 }
 0x13e   :  { %928 = vlog2.f32 %v383_v63  ;;  %v281_v34 = vadd.f32 %v280_v15, %v273_v23 }
 0x13f   :  { %v919_v4 = vpop.eup %918  ;;  %v247_v39 = vadd.f32 1e-10, %v246_v22 }
 0x140   :  { %v418_v17 = vadd.f32 1.0, %v919_v4  ;;  %v921_v26 = vpop.eup %920  ;;  %v282_v45 = vadd.f32 1e-10, %v281_v34 }
 0x141   :  { %v923_v29 = vpop.eup %922  ;;  %v249_v44 = vadd.f32 %v247_v39, %v214_v32 }
 0x142   :  { %v925_v35 = vpop.eup %924  ;;  %v350_v52 = vmul.f32 0.6931472, %v923_v29 }
 0x143   :  { %v927_v37 = vpop.eup %926  ;;  %v453_v47 = vadd.f32 1.0, %v925_v35  ;;  %v284_v61 = vadd.f32 %v282_v45, %v249_v44  ;;  %v448_v44 = vmax.f32 %v1575_v1, 0.0 }
 0x144   :  { %v488_v49 = vadd.f32 1.0, %v927_v37  ;;  %v351_v5 = vadd.f32 %v350_v52, %v343_v60 }
 0x14c   :  { %v515_v13 = vpop.f32.mrf.mxu1 }
 0x14d   :  { %v1586_v24 = vadd.f32 %v1528_v0, %v515_v13  ;;  %v620_v59 = vpop.f32.mrf.mxu0 }
 0x14e   :  { %v1604_v12 = vadd.f32 %v1528_v0, %v620_v59 }
 0x14f   :  { %v519_v40 = vand.u32 2147483647, %v1586_v24 }
 0x150   :  { %v624_v27 = vand.u32 2147483647, %v1604_v12 }
 0x151   :  { %v520_v58 = vsub.f32 0.0, %v519_v40  ;;  %v315_v40 = vmul.f32 0.6931472, %v921_v26 }
 0x152   :  { %v550_v25 = vpop.f32.mrf.mxu2  ;;  %v625_v42 = vsub.f32 0.0, %v624_v27 }
 0x153   :  { %v1590_v33 = vadd.f32 %v1528_v0, %v550_v25  ;;  %v585_v41 = vpop.f32.mrf.mxu3  ;;  %v521_v16 = vmul.f32 1.442695, %v520_v58  ;;  %v316_v53 = vadd.f32 %v315_v40, %v308_v46 }
 0x154   :  { %v1598_v54 = vadd.f32 %v1528_v0, %v585_v41  ;;  %v929_v41 = vpop.eup %928  ;;  %v626_v58 = vmul.f32 1.442695, %v625_v42 }
 0x155   :  { %v554_v50 = vand.u32 2147483647, %v1590_v33  ;;  %930 = vpow2.f32 %v521_v16  ;;  %v385_v55 = vmul.f32 0.6931472, %v929_v41  ;;  %v317_v7 = vadd.f32 1e-10, %v316_v53 }
 0x156   :  { %v589_v13 = vand.u32 2147483647, %v1598_v54  ;;  %932 = vlog2.f32 %v418_v17  ;;  %v413_v17 = vmax.f32 %v1569_v48, 0.0 }
 0x157   :  { %v555_v9 = vsub.f32 0.0, %v554_v50  ;;  %v493_v50 = vadd.f32 %v1578_v6, %v458_v36  ;;  %v319_v14 = vadd.f32 %v317_v7, %v284_v61 }
 0x158   :  { %v590_v28 = vsub.f32 0.0, %v589_v13 }
 0x159   :  { %v556_v25 = vmul.f32 1.442695, %v555_v9  ;;  %v528_v57 = vadd.f32 %v1586_v24, %v493_v50  ;;  %v386_v9 = vadd.f32 %v385_v55, %v378_v62 }
 0x15a   :  { %v591_v43 = vmul.f32 1.442695, %v590_v28 }
 0x15b   :  { %934 = vpow2.f32 %v556_v25  ;;  %v931_v51 = vpop.eup %930  ;;  %v563_v4 = vadd.f32 %v1590_v33, %v528_v57  ;;  %v352_v25 = vadd.f32 1e-10, %v351_v5  ;;  %v387_v26 = vadd.f32 1e-10, %v386_v9 }
 0x15c   :  { %v933_v56 = vpop.eup %932  ;;  %936 = vpow2.f32 %v591_v43  ;;  %v523_v63 = vadd.f32 1.0, %v931_v51 }
 0x15d   :  { %938 = vlog2.f32 %v453_v47  ;;  %v420_v11 = vmul.f32 0.6931472, %v933_v56  ;;  %v598_v18 = vadd.f32 %v1598_v54, %v563_v4  ;;  %v354_v34 = vadd.f32 %v352_v25, %v319_v14 }
 0x15e   :  { %940 = vlog2.f32 %v488_v49  ;;  %v483_v4 = vmax.f32 %v1578_v6, 0.0 }
 0x15f   :  { %942 = vpow2.f32 %v626_v58  ;;  %v421_v29 = vadd.f32 %v420_v11, %v413_v17  ;;  %v633_v40 = vadd.f32 %v1604_v12, %v598_v18  ;;  %v389_v42 = vadd.f32 %v387_v26, %v354_v34 }
 0x160   :  { %944 = vlog2.f32 %v523_v63 }
 0x161   :  { %v935_v59 = vpop.eup %934  ;;  %v422_v49 = vadd.f32 1e-10, %v421_v29 }
 0x162   :  { %v558_v13 = vadd.f32 1.0, %v935_v59  ;;  %v937_v16 = vpop.eup %936 }
 0x163   :  { %v939_v23 = vpop.eup %938  ;;  %v593_v35 = vadd.f32 1.0, %v937_v16  ;;  %v424_v5 = vadd.f32 %v422_v49, %v389_v42 }
 0x164   :  { %v941_v28 = vpop.eup %940  ;;  %946 = vlog2.f32 %v558_v13  ;;  %v455_v39 = vmul.f32 0.6931472, %v939_v23  ;;  %v553_v23 = vmax.f32 %v1590_v33, 0.0 }
 0x165   :  { %v943_v37 = vpop.eup %942  ;;  %v490_v43 = vmul.f32 0.6931472, %v941_v28  ;;  %948 = vlog2.f32 %v593_v35 }
 0x166   :  { %v945_v47 = vpop.eup %944  ;;  %v628_v55 = vadd.f32 1.0, %v943_v37  ;;  %v456_v59 = vadd.f32 %v455_v39, %v448_v44 }
 0x167   :  { %v525_v62 = vmul.f32 0.6931472, %v945_v47  ;;  %v491_v14 = vadd.f32 %v490_v43, %v483_v4 }
 0x16a   :  { %v947_v58 = vpop.eup %946 }
 0x16b   :  { %v560_v11 = vmul.f32 0.6931472, %v947_v58  ;;  %v949_v18 = vpop.eup %948 }
 0x16c   :  { %v595_v43 = vmul.f32 0.6931472, %v949_v18 }
 0x16d   :  { %v561_v34 = vadd.f32 %v560_v11, %v553_v23 }
 0x16e   :  { %v655_v15 = vpop.f32.mrf.mxu1 }
 0x16f   :  { %v1620_v20 = vadd.f32 %v1528_v0, %v655_v15  ;;  %v760_v22 = vpop.f32.mrf.mxu0  ;;  %v457_v15 = vadd.f32 1e-10, %v456_v59 }
 0x170   :  { %v1623_v27 = vadd.f32 %v1528_v0, %v760_v22 }
 0x171   :  { %v659_v32 = vand.u32 2147483647, %v1620_v20  ;;  %v668_v51 = vadd.f32 %v1620_v20, %v633_v40 }
 0x172   :  { %v764_v36 = vand.u32 2147483647, %v1623_v27 }
 0x173   :  { %v660_v41 = vsub.f32 0.0, %v659_v32  ;;  %v459_v32 = vadd.f32 %v457_v15, %v424_v5 }
 0x174   :  { %v765_v45 = vsub.f32 0.0, %v764_v36  ;;  %v690_v46 = vpop.f32.mrf.mxu2  ;;  %v492_v36 = vadd.f32 1e-10, %v491_v14 }
 0x175   :  { %v661_v50 = vmul.f32 1.442695, %v660_v41  ;;  %v1631_v52 = vadd.f32 %v1528_v0, %v690_v46  ;;  %v725_v53 = vpop.f32.mrf.mxu3 }
 0x176   :  { %v766_v56 = vmul.f32 1.442695, %v765_v45  ;;  %v1634_v57 = vadd.f32 %v1528_v0, %v725_v53  ;;  %v518_v0 = vmax.f32 %v1586_v24, 0.0  ;;  %v494_v49 = vadd.f32 %v492_v36, %v459_v32 }
 0x177   :  { %950 = vpow2.f32 %v661_v50  ;;  %v694_v60 = vand.u32 2147483647, %v1631_v52  ;;  %v703_v61 = vadd.f32 %v1631_v52, %v668_v51  ;;  %v588_v50 = vmax.f32 %v1598_v54, 0.0 }
 0x178   :  { %952 = vpow2.f32 %v766_v56  ;;  %v729_v63 = vand.u32 2147483647, %v1634_v57  ;;  %v526_v22 = vadd.f32 %v525_v62, %v518_v0  ;;  %v623_v51 = vmax.f32 %v1604_v12, 0.0 }
 0x179   :  { %v695_v7 = vsub.f32 0.0, %v694_v60  ;;  %v738_v9 = vadd.f32 %v1634_v57, %v703_v61  ;;  %954 = vlog2.f32 %v628_v55  ;;  %v596_v60 = vadd.f32 %v595_v43, %v588_v50 }
 0x17a   :  { %v730_v13 = vsub.f32 0.0, %v729_v63  ;;  %v527_v42 = vadd.f32 1e-10, %v526_v22  ;;  %v728_v43 = vmax.f32 %v1634_v57, 0.0 }
 0x17b   :  { %v696_v16 = vmul.f32 1.442695, %v695_v7  ;;  %v773_v17 = vadd.f32 %v1623_v27, %v738_v9 }
 0x17c   :  { %v731_v25 = vmul.f32 1.442695, %v730_v13  ;;  %v529_v59 = vadd.f32 %v527_v42, %v494_v49  ;;  %v763_v42 = vmax.f32 %v1623_v27, 0.0 }
 0x17d   :  { %v951_v26 = vpop.eup %950  ;;  %956 = vpow2.f32 %v696_v16  ;;  %v1644_v28 = vmul.f32 0.05, %v773_v17  ;;  %v597_v16 = vadd.f32 1e-10, %v596_v60 }
 0x17e   :  { %v953_v29 = vpop.eup %952  ;;  %v663_v35 = vadd.f32 1.0, %v951_v26  ;;  %958 = vpow2.f32 %v731_v25 }
 0x17f   :  { %v777_v37 = vsub.f32 %v1534_v3, %v1644_v28  ;;  %v780_v39 = vsub.f32 %v1531_v2, %v1644_v28  ;;  %v783_v40 = vsub.f32 %v1539_v8, %v1644_v28  ;;  %839 = vst.msk [vmem:[#allocation2] sm:$0x3] %vm838_vm1, %v1644_v28  ;;  %v955_v41 = vpop.eup %954  ;;  %v768_v44 = vadd.f32 1.0, %v953_v29 }
 0x180   :  { %960 = vlog2.f32 %v663_v35  ;;  %v786_v47 = vsub.f32 %v1542_v10, %v1644_v28  ;;  %v562_v3 = vadd.f32 1e-10, %v561_v34  ;;  %v789_v2 = vsub.f32 %v1547_v19, %v1644_v28 }
 0x181   :  { %v778_v45 = vmul.f32 %v777_v37, %v777_v37  ;;  %v781_v46 = vmul.f32 %v780_v39, %v780_v39  ;;  %v630_v53 = vmul.f32 0.6931472, %v955_v41  ;;  %v784_v56 = vmul.f32 %v783_v40, %v783_v40 }
 0x182   :  { %962 = vlog2.f32 %v768_v44  ;;  %v787_v63 = vmul.f32 %v786_v47, %v786_v47  ;;  %v792_v4 = vsub.f32 %v1550_v21, %v1644_v28  ;;  %v564_v7 = vadd.f32 %v562_v3, %v529_v59 }
 0x183   :  { %v957_v8 = vpop.eup %956  ;;  %v782_v55 = vadd.f32 %v781_v46, %v778_v45  ;;  %v658_v19 = vmax.f32 %v1620_v20, 0.0  ;;  %v790_v9 = vmul.f32 %v789_v2, %v789_v2  ;;  %v795_v13 = vsub.f32 %v1555_v30, %v1644_v28 }
 0x184   :  { %v959_v58 = vpop.eup %958  ;;  %v698_v61 = vadd.f32 1.0, %v957_v8  ;;  %v631_v14 = vadd.f32 %v630_v53, %v623_v51  ;;  %v798_v15 = vsub.f32 %v1558_v31, %v1644_v28  ;;  %v793_v21 = vmul.f32 %v792_v4, %v792_v4 }
 0x185   :  { %v733_v62 = vadd.f32 1.0, %v959_v58  ;;  %v785_v10 = vadd.f32 %v784_v56, %v782_v55  ;;  %v599_v23 = vadd.f32 %v597_v16, %v564_v7  ;;  %v796_v26 = vmul.f32 %v795_v13, %v795_v13 }
 0x186   :  { %v961_v5 = vpop.eup %960  ;;  %964 = vlog2.f32 %v698_v61  ;;  %v801_v29 = vsub.f32 %v1562_v38, %v1644_v28  ;;  %v632_v34 = vadd.f32 1e-10, %v631_v14  ;;  %v693_v35 = vmax.f32 %v1631_v52, 0.0 }
 0x187   :  { %v665_v0 = vmul.f32 0.6931472, %v961_v5  ;;  %966 = vlog2.f32 %v733_v62  ;;  %v788_v11 = vadd.f32 %v787_v63, %v785_v10  ;;  %v799_v30 = vmul.f32 %v798_v15, %v798_v15 }
 0x188   :  { %v963_v22 = vpop.eup %962  ;;  %v804_v36 = vsub.f32 %v1569_v48, %v1644_v28  ;;  %v807_v38 = vsub.f32 %v1575_v1, %v1644_v28  ;;  %v634_v45 = vadd.f32 %v632_v34, %v599_v23  ;;  %v802_v49 = vmul.f32 %v801_v29, %v801_v29 }
 0x189   :  { %v666_v17 = vadd.f32 %v665_v0, %v658_v19  ;;  %v791_v18 = vadd.f32 %v790_v9, %v788_v11  ;;  %v770_v39 = vmul.f32 0.6931472, %v963_v22  ;;  %v810_v48 = vsub.f32 %v1578_v6, %v1644_v28 }
 0x18a   :  { %v805_v50 = vmul.f32 %v804_v36, %v804_v36  ;;  %v808_v55 = vmul.f32 %v807_v38, %v807_v38  ;;  %v813_v59 = vsub.f32 %v1586_v24, %v1644_v28  ;;  %v816_v62 = vsub.f32 %v1590_v33, %v1644_v28 }
 0x18b   :  { %v794_v25 = vadd.f32 %v793_v21, %v791_v18  ;;  %v667_v37 = vadd.f32 1e-10, %v666_v17  ;;  %v771_v8 = vadd.f32 %v770_v39, %v763_v42  ;;  %v811_v60 = vmul.f32 %v810_v48, %v810_v48 }
 0x18c   :  { %v965_v32 = vpop.eup %964  ;;  %v814_v6 = vmul.f32 %v813_v59, %v813_v59  ;;  %v819_v5 = vsub.f32 %v1598_v54, %v1644_v28  ;;  %v817_v9 = vmul.f32 %v816_v62, %v816_v62  ;;  %v822_v24 = vsub.f32 %v1604_v12, %v1644_v28 }
 0x18d   :  { %v967_v31 = vpop.eup %966  ;;  %v700_v40 = vmul.f32 0.6931472, %v965_v32  ;;  %v797_v41 = vadd.f32 %v796_v26, %v794_v25  ;;  %v669_v2 = vadd.f32 %v667_v37, %v634_v45  ;;  %v772_v63 = vadd.f32 1e-10, %v771_v8 }
 0x18e   :  { %v735_v44 = vmul.f32 0.6931472, %v967_v31  ;;  %v820_v13 = vmul.f32 %v819_v5, %v819_v5  ;;  %v825_v33 = vsub.f32 %v1620_v20, %v1644_v28  ;;  %v823_v15 = vmul.f32 %v822_v24, %v822_v24 }
 0x18f   :  { %v701_v46 = vadd.f32 %v700_v40, %v693_v35  ;;  %v800_v47 = vadd.f32 %v799_v30, %v797_v41  ;;  %v828_v16 = vsub.f32 %v1631_v52, %v1644_v28  ;;  %v831_v18 = vsub.f32 %v1634_v57, %v1644_v28 }
 0x190   :  { %v736_v3 = vadd.f32 %v735_v44, %v728_v43  ;;  %v826_v17 = vmul.f32 %v825_v33, %v825_v33  ;;  %v834_v12 = vsub.f32 %v1623_v27, %v1644_v28 }
 0x191   :  { %v702_v51 = vadd.f32 1e-10, %v701_v46  ;;  %v803_v53 = vadd.f32 %v802_v49, %v800_v47  ;;  %v829_v22 = vmul.f32 %v828_v16, %v828_v16  ;;  %v832_v25 = vmul.f32 %v831_v18, %v831_v18 }
 0x192   :  { %v737_v56 = vadd.f32 1e-10, %v736_v3  ;;  %v835_v20 = vmul.f32 %v834_v12, %v834_v12 }
 0x193   :  { %v806_v58 = vadd.f32 %v805_v50, %v803_v53  ;;  %v704_v1 = vadd.f32 %v702_v51, %v669_v2 }
 0x195   :  { %v809_v61 = vadd.f32 %v808_v55, %v806_v58  ;;  %v739_v10 = vadd.f32 %v737_v56, %v704_v1 }
 0x197   :  { %v812_v4 = vadd.f32 %v811_v60, %v809_v61  ;;  %v774_v7 = vadd.f32 %v772_v63, %v739_v10 }
 0x199   :  { %v815_v19 = vadd.f32 %v814_v6, %v812_v4  ;;  %v776_v0 = vmul.f32 0.05, %v774_v7 }
 0x19b   :  { %v818_v11 = vadd.f32 %v817_v9, %v815_v19  ;;  %841 = vst.msk [vmem:[#allocation2] sm:$0x3] %vm840_vm2, %v776_v0 }
 0x19d   :  { %v821_v14 = vadd.f32 %v820_v13, %v818_v11 }
 0x19f   :  { %v824_v54 = vadd.f32 %v823_v15, %v821_v14 }
 0x1a1   :  { %v827_v21 = vadd.f32 %v826_v17, %v824_v54 }
 0x1a3   :  { %v830_v23 = vadd.f32 %v829_v22, %v827_v21 }
 0x1a5   :  { %v833_v26 = vadd.f32 %v832_v25, %v830_v23 }
 0x1a7   :  { %v836_v29 = vadd.f32 %v835_v20, %v833_v26 }
 0x1a9   :  { %v837_v32 = vmul.f32 0.05263158, %v836_v29 }
 0x1ab   :  { %843 = vrot.lane.b32.xlu0 %v837_v32, %s994_s4 }
 0x21d   :  { %v844_v52 = vpop.permute.xlu0 %843 }
 0x21e   :  { %847 = vst.msk [vmem:[#allocation2] sm:$0x3] %vm846_vm3, %v844_v52 }
 0x21f   :  { %858 = dma.vmem_to_hbm [thread:$0]  %s854_s21, 32, %s856_s24, [#allocation3]  }
 0x220   :  { %992 = dma.done.wait [#allocation3], 32  }
 0x221   :  { %993 = vsyncadd [#allocation3], 4294967264 }
 0x222   :  { %863 = vsyncpa [#allocation3], 1 }

</bundles_post_ra>
